<compile_context>
chip_gen: v5e
topology: v5e:2x2
jax: 0.10.0
libtpu: 0.0.40
codegen_flags: <defaults>
</compile_context>

<pallas_src>
import functools

import jax
import jax.numpy as jnp
from jax import lax
from jax.experimental import pallas as pl
from jax.experimental.pallas import tpu as pltpu
import numpy as np


# ---------------- packed-weight layout ----------------


def _round_up(x, m):
    return (x + m - 1) // m * m


def _slab_layout(feat, input_size, hidden_size):
    """Row offsets of every weight inside the single packed (rows, 8H) f32 slab."""
    F2 = 2 * feat
    IN2 = 2 * input_size
    H2 = 2 * hidden_size
    GG = 4 * H2                      # combined gate width for both streams (8H)
    FP = _round_up(F2, 8)            # padded feature rows for the x slab
    r_w1 = 0
    r_wih = r_w1 + FP
    r_whh = r_wih + IN2
    r_wa1 = r_whh + H2
    r_bias = r_wa1 + H2
    rows = _round_up(r_bias + 8, 8)
    return dict(F=feat, IN=input_size, H=hidden_size, F2=F2, IN2=IN2, H2=H2,
                GG=GG, FP=FP, r_w1=r_w1, r_wih=r_wih, r_whh=r_whh,
                r_wa1=r_wa1, r_bias=r_bias, rows=rows)


def pack_weights(params, layout):
    """One-time host-side packing (outside jit): every weight pre-transposed and
    arranged block-diagonally over the two streams inside one padded slab."""
    L = layout
    F, IN, H = L["F"], L["IN"], L["H"]
    H2, GG = L["H2"], L["GG"]
    slab = np.zeros((L["rows"], GG), np.float32)

    def npa(a):
        return np.asarray(a, np.float32)

    # dense input projection (block-diag over the 2 streams, pre-transposed)
    slab[L["r_w1"] + 0:L["r_w1"] + F, 0:IN] = npa(params["linear_chlov"]["w"]).T
    slab[L["r_w1"] + F:L["r_w1"] + 2 * F, IN:2 * IN] = npa(params["linear_history"]["w"]).T

    # LSTM weights: columns ordered gate-major [i_c i_h | f_c f_h | g_c g_h | o_c o_h]
    wih_c, whh_c, bih_c, bhh_c = [npa(a) for a in params["lstm_chlov"]]
    wih_h, whh_h, bih_h, bhh_h = [npa(a) for a in params["lstm_history"]]
    bg_c, bg_h = bih_c + bhh_c, bih_h + bhh_h
    for k in range(4):                      # PyTorch gate order: i, f, g, o
        cs = k * H2
        gc = slice(k * H, (k + 1) * H)
        slab[L["r_wih"] + 0:L["r_wih"] + IN, cs:cs + H] = wih_c.T[:, gc]
        slab[L["r_wih"] + IN:L["r_wih"] + 2 * IN, cs + H:cs + H2] = wih_h.T[:, gc]
        slab[L["r_whh"] + 0:L["r_whh"] + H, cs:cs + H] = whh_c.T[:, gc]
        slab[L["r_whh"] + H:L["r_whh"] + H2, cs + H:cs + H2] = whh_h.T[:, gc]
        slab[L["r_bias"] + 1, cs:cs + H] = bg_c[gc]
        slab[L["r_bias"] + 1, cs + H:cs + H2] = bg_h[gc]

    # attentive pooling (block-diag W1, then [chlov | history] packed vectors)
    slab[L["r_wa1"] + 0:L["r_wa1"] + H, 0:H] = npa(params["attn_chlov"][0]).T
    slab[L["r_wa1"] + H:L["r_wa1"] + H2, H:H2] = npa(params["attn_history"][0]).T

    rb = L["r_bias"]
    slab[rb + 0, 0:IN] = npa(params["linear_chlov"]["b"])
    slab[rb + 0, IN:2 * IN] = npa(params["linear_history"]["b"])
    slab[rb + 2, 0:H] = npa(params["attn_chlov"][1])
    slab[rb + 2, H:H2] = npa(params["attn_history"][1])
    slab[rb + 3, 0:H] = npa(params["attn_chlov"][2]).reshape(-1)
    slab[rb + 3, H:H2] = npa(params["attn_history"][2]).reshape(-1)
    slab[rb + 4, 0:H2] = npa(params["linear_out"]["w"]).reshape(-1)
    slab[rb + 5, 0] = float(np.asarray(params["linear_out"]["b"]).reshape(()))
    return jnp.asarray(slab)


# ---------------- fused Pallas kernel ----------------


def _fused_kernel(x_ref, w_ref, out_ref, hs_ref, *, T, N, layout):
    """Entire forward pass, both streams, one kernel invocation.

    x_ref  : (T*N, FP)   staged inputs, row = t*N + n, cols [chlov F | history F | pad]
    w_ref  : (rows, 8H)  packed weight slab (see pack_weights)
    out_ref: (1, T)      lane-dense predictions
    hs_ref : (T, N, 2H)  VMEM scratch holding the hidden-state sequence
    """
    L = layout
    H, H2, GG, FP, IN2 = L["H"], L["H2"], L["GG"], L["FP"], L["IN2"]

    # ---- static VMEM views of the packed slab (no runtime transposes) ----
    w1 = w_ref[L["r_w1"]:L["r_w1"] + FP, 0:IN2]          # (FP, 2*IN)
    wih = w_ref[L["r_wih"]:L["r_wih"] + IN2, :]          # (2*IN, 8H)
    whh = w_ref[L["r_whh"]:L["r_whh"] + H2, :]           # (2H, 8H)
    wa1 = w_ref[L["r_wa1"]:L["r_wa1"] + H2, 0:H2]        # (2H, 2H)
    bias = w_ref[L["r_bias"]:L["r_bias"] + 8, :]         # (8, 8H) bias block
    b1 = bias[0:1, 0:IN2]
    bg = bias[1:2, :]
    ba1 = bias[2:3, 0:H2]
    u = bias[3:4, 0:H2]
    wout = bias[4:5, 0:H2]
    bout = bias[5:6, 0:1]

    # ---- hoisted, time-invariant projection for all T steps (both streams) ----
    # xg[t*N+n] = relu(x @ W1 + b1) @ W_ih + (b_ih + b_hh)
    proj = jnp.maximum(
        jnp.dot(x_ref[...], w1, preferred_element_type=jnp.float32) + b1, 0.0)
    xg = jnp.dot(proj, wih, preferred_element_type=jnp.float32) + bg     # (T*N, 8H)

    # Gate nonlinearity constants: ONE tanh pass replaces sigmoid+tanh via
    # sigmoid(z) = 0.5 * tanh(z / 2) + 0.5.  g-block = lanes [2*2H, 3*2H).
    lane = lax.broadcasted_iota(jnp.int32, (1, GG), 1)
    is_g = jnp.logical_and(lane >= 2 * H2, lane < 3 * H2)
    pre = jnp.where(is_g, 1.0, 0.5).astype(jnp.float32)

    # ---- recurrence: fully unrolled; h/c packed (N, 2H) live in vregs ----
    h = jnp.zeros((N, H2), jnp.float32)
    c = jnp.zeros((N, H2), jnp.float32)
    for t in range(T):
        z = xg[t * N:(t + 1) * N, :] + jnp.dot(
            h, whh, preferred_element_type=jnp.float32)                  # (N, 8H)
        tz = jnp.tanh(z * pre)                                           # 1 EUP pass
        act = jnp.where(is_g, tz, 0.5 * tz + 0.5)                        # [i|f|g|o]
        c = act[:, H2:2 * H2] * c + act[:, 0:H2] * act[:, 2 * H2:3 * H2]
        h = act[:, 3 * H2:GG] * jnp.tanh(c)
        hs_ref[t] = h        # stash; attention is hoisted off the critical path

    # ---- attentive pooling, batched over all T steps in one pass ----
    hs = hs_ref[...]                                                     # (T, N, 2H)
    hs2 = hs.reshape(T * N, H2)
    a = jnp.tanh(jnp.dot(hs2, wa1, preferred_element_type=jnp.float32) + ba1)
    au = a * u
    sc = jnp.sum(au[:, 0:H], axis=-1, keepdims=True).reshape(T, N, 1)
    sh = jnp.sum(au[:, H:H2], axis=-1, keepdims=True).reshape(T, N, 1)

    def softmax_n(s):              # softmax over the per-step batch dimension N
        e = jnp.exp(s - jnp.max(s, axis=1, keepdims=True))
        return e / jnp.sum(e, axis=1, keepdims=True)

    pooled_c = jnp.sum(softmax_n(sc) * hs[..., 0:H], axis=1)             # (T, H)
    pooled_h = jnp.sum(softmax_n(sh) * hs[..., H:H2], axis=1)            # (T, H)

    # output linear: split the (1, 2H) weight per stream; bias folded into slab
    y = (jnp.sum(pooled_c * wout[:, 0:H], axis=-1, keepdims=True)
         + jnp.sum(pooled_h * wout[:, H:H2], axis=-1, keepdims=True)
         + bout)                                                         # (T, 1)
    out_ref[...] = y.reshape(1, T)                                       # lane-dense


# ---------------- host wrapper ----------------


def lstm_model_forward(w_slab, chlov, history, *, layout):
    # chlov/history: (B, L, F).  nn.LSTM default batch_first=False => the
    # recurrence runs over axis 0 (T=B) with axis 1 (N=L) as the batch.
    B, Lseq, F = chlov.shape
    T, N = B, Lseq
    L = layout

    # Stage both streams into one (T*N, FP) slab: [chlov feats | history feats | 0].
    x = jnp.concatenate([chlov.reshape(T * N, F), history.reshape(T * N, F)], axis=1)
    if L["FP"] > 2 * F:
        x = jnp.pad(x, ((0, 0), (0, L["FP"] - 2 * F)))

    kernel = functools.partial(_fused_kernel, T=T, N=N, layout=L)
    out = pl.pallas_call(
        kernel,
        out_shape=jax.ShapeDtypeStruct((1, T), jnp.float32),
        in_specs=[pl.BlockSpec(memory_space=pltpu.MemorySpace.VMEM),
                  pl.BlockSpec(memory_space=pltpu.MemorySpace.VMEM)],
        out_specs=pl.BlockSpec(memory_space=pltpu.MemorySpace.VMEM),
        scratch_shapes=[pltpu.VMEM((T, N, L["H2"]), jnp.float32)],
    )(x, w_slab)
    # module returns (B, 1); the kernel wrote a lane-dense (1, T) row
    return out.reshape(T, 1)


# ---------------- parameters ----------------


def _uniform(key, shape, scale):
    return jax.random.uniform(key, shape, jnp.float32, -scale, scale)


def init_params(key, feat=5, input_size=16, hidden_size=32):
    ks = jax.random.split(key, 20)
    H, IN = hidden_size, input_size
    s_in = 1.0 / np.sqrt(feat)
    s_h = 1.0 / np.sqrt(H)
    s_out = 1.0 / np.sqrt(2 * H)
    return {
        "linear_chlov": {"w": _uniform(ks[0], (IN, feat), s_in),
                         "b": _uniform(ks[1], (IN,), s_in)},
        "linear_history": {"w": _uniform(ks[2], (IN, feat), s_in),
                           "b": _uniform(ks[3], (IN,), s_in)},
        "lstm_chlov": (_uniform(ks[4], (4 * H, IN), s_h),
                       _uniform(ks[5], (4 * H, H), s_h),
                       _uniform(ks[6], (4 * H,), s_h),
                       _uniform(ks[7], (4 * H,), s_h)),
        "lstm_history": (_uniform(ks[8], (4 * H, IN), s_h),
                         _uniform(ks[9], (4 * H, H), s_h),
                         _uniform(ks[10], (4 * H,), s_h),
                         _uniform(ks[11], (4 * H,), s_h)),
        "attn_chlov": (_uniform(ks[12], (H, H), s_h),
                       _uniform(ks[13], (H,), s_h),
                       _uniform(ks[14], (1, H), s_h)),
        "attn_history": (_uniform(ks[15], (H, H), s_h),
                         _uniform(ks[16], (H,), s_h),
                         _uniform(ks[17], (1, H), s_h)),
        "linear_out": {"w": _uniform(ks[18], (1, 2 * H), s_out),
                       "b": _uniform(ks[19], (1,), s_out)},
    }


# ---------------- pure-JAX reference for sanity check ----------------


def _ref_lstm(x, w_ih, w_hh, b_ih, b_hh):
    H = w_hh.shape[1]

    def step(carry, xt):
        hp, cp = carry
        gates = xt @ w_ih.T + hp @ w_hh.T + b_ih + b_hh
        i = jax.nn.sigmoid(gates[:, :H])
        f = jax.nn.sigmoid(gates[:, H:2 * H])
        g = jnp.tanh(gates[:, 2 * H:3 * H])
        o = jax.nn.sigmoid(gates[:, 3 * H:])
        c = f * cp + i * g
        hh = o * jnp.tanh(c)
        return (hh, c), hh

    N = x.shape[1]
    init = (jnp.zeros((N, H), jnp.float32), jnp.zeros((N, H), jnp.float32))
    _, hs = lax.scan(step, init, x)
    return hs


def _ref_attn(mem, w1, b1, u):
    h = jnp.tanh(mem @ w1.T + b1)
    score = jnp.squeeze(h @ u.T, -1)
    alpha = jax.nn.softmax(score, -1)
    return jnp.sum(alpha[..., None] * mem, axis=-2)


def ref_forward(params, chlov, history):
    c = jax.nn.relu(chlov @ params["linear_chlov"]["w"].T
                    + params["linear_chlov"]["b"])
    h = jax.nn.relu(history @ params["linear_history"]["w"].T
                    + params["linear_history"]["b"])
    c = _ref_lstm(c, *params["lstm_chlov"])
    h = _ref_lstm(h, *params["lstm_history"])
    c = _ref_attn(c, *params["attn_chlov"])
    h = _ref_attn(h, *params["attn_history"])
    x = jnp.concatenate([c, h], axis=1)
    return x @ params["linear_out"]["w"].T + params["linear_out"]["b"]


# ---------------- main ----------------

if __name__ == "__main__":
    key = jax.random.PRNGKey(0)
    kp, kc, kh = jax.random.split(key, 3)

    B, Lseq, F = 8, 4, 5             # full_chlov=True -> 5 features
    input_size, hidden_size = 16, 32

    params = init_params(kp, feat=F, input_size=input_size,
                         hidden_size=hidden_size)
    chlov = jax.random.normal(kc, (B, Lseq, F), jnp.float32)
    history = jax.random.normal(kh, (B, Lseq, F), jnp.float32)

    layout = _slab_layout(F, input_size, hidden_size)
    w_slab = pack_weights(params, layout)          # one-time host-side packing

    forward = jax.jit(functools.partial(lstm_model_forward, layout=layout))
    out = jax.block_until_ready(forward(w_slab, chlov, history))
    assert out.shape == (B, 1), out.shape

    ref = jax.block_until_ready(ref_forward(params, chlov, history))
    np.testing.assert_allclose(np.asarray(out), np.asarray(ref),
                               rtol=2e-4, atol=2e-4)

    print("KERNEL_OK")
</pallas_src>

<mosaic_0001>
module attributes {stable_mosaic.version = 11 : i64} {
  func.func @_fused_kernel(%arg0: memref<32x16xf32, #tpu.memory_space<vmem>>, %arg1: memref<184x256xf32, #tpu.memory_space<vmem>>, %arg2: memref<1x8xf32, #tpu.memory_space<vmem>>, %arg3: memref<8x4x64xf32, #tpu.memory_space<vmem>>) attributes {dimension_semantics = [], scalar_prefetch = 0 : i64, scratch_operands = 1 : i64, tpu.core_type = #tpu.core_type<tc>} {
    %c0 = arith.constant 0 : index
    %c0_0 = arith.constant 0 : index
    %0 = vector.load %arg1[%c0, %c0_0] : memref<184x256xf32, #tpu.memory_space<vmem>>, vector<16x32xf32>
    %c16 = arith.constant 16 : index
    %c0_1 = arith.constant 0 : index
    %1 = vector.load %arg1[%c16, %c0_1] : memref<184x256xf32, #tpu.memory_space<vmem>>, vector<32x256xf32>
    %c48 = arith.constant 48 : index
    %c0_2 = arith.constant 0 : index
    %2 = vector.load %arg1[%c48, %c0_2] : memref<184x256xf32, #tpu.memory_space<vmem>>, vector<64x256xf32>
    %c112 = arith.constant 112 : index
    %c0_3 = arith.constant 0 : index
    %3 = vector.load %arg1[%c112, %c0_3] : memref<184x256xf32, #tpu.memory_space<vmem>>, vector<64x64xf32>
    %c176 = arith.constant 176 : index
    %c0_4 = arith.constant 0 : index
    %4 = vector.load %arg1[%c176, %c0_4] : memref<184x256xf32, #tpu.memory_space<vmem>>, vector<8x256xf32>
    %5 = vector.extract_strided_slice %4 {offsets = [0, 0], sizes = [1, 32], strides = [1, 1]} : vector<8x256xf32> to vector<1x32xf32>
    %6 = vector.extract_strided_slice %4 {offsets = [1, 0], sizes = [1, 256], strides = [1, 1]} : vector<8x256xf32> to vector<1x256xf32>
    %7 = vector.extract_strided_slice %4 {offsets = [2, 0], sizes = [1, 64], strides = [1, 1]} : vector<8x256xf32> to vector<1x64xf32>
    %8 = vector.extract_strided_slice %4 {offsets = [3, 0], sizes = [1, 64], strides = [1, 1]} : vector<8x256xf32> to vector<1x64xf32>
    %9 = vector.extract_strided_slice %4 {offsets = [4, 0], sizes = [1, 64], strides = [1, 1]} : vector<8x256xf32> to vector<1x64xf32>
    %10 = vector.extract_strided_slice %4 {offsets = [5, 0], sizes = [1, 1], strides = [1, 1]} : vector<8x256xf32> to vector<1x1xf32>
    %c0_5 = arith.constant 0 : index
    %c0_6 = arith.constant 0 : index
    %11 = vector.load %arg0[%c0_5, %c0_6] : memref<32x16xf32, #tpu.memory_space<vmem>>, vector<32x16xf32>
    %cst = arith.constant dense<0.000000e+00> : vector<32x32xf32>
    %12 = tpu.matmul %11, %0, %cst {dimension_numbers = #tpu.dot_dimension_numbers<[1], [0], [0], [1], [0, 0, 1, 1], [], []>} : vector<32x16xf32>, vector<16x32xf32>, vector<32x32xf32> -> vector<32x32xf32>
    %13 = vector.broadcast %5 : vector<1x32xf32> to vector<32x32xf32>
    %14 = arith.addf %12, %13 : vector<32x32xf32>
    %cst_7 = arith.constant 0.000000e+00 : f32
    %15 = vector.broadcast %cst_7 : f32 to vector<32x32xf32>
    %16 = arith.maximumf %14, %15 : vector<32x32xf32>
    %cst_8 = arith.constant dense<0.000000e+00> : vector<32x256xf32>
    %17 = tpu.matmul %16, %1, %cst_8 {dimension_numbers = #tpu.dot_dimension_numbers<[1], [0], [0], [1], [0, 0, 1, 1], [], []>} : vector<32x32xf32>, vector<32x256xf32>, vector<32x256xf32> -> vector<32x256xf32>
    %18 = vector.broadcast %6 : vector<1x256xf32> to vector<32x256xf32>
    %19 = arith.addf %17, %18 : vector<32x256xf32>
    %20 = tpu.iota {dimensions = array<i32: 1>} : vector<1x256xi32>
    %c128_i32 = arith.constant 128 : i32
    %21 = vector.broadcast %c128_i32 : i32 to vector<1x256xi32>
    %22 = arith.cmpi sge, %20, %21 : vector<1x256xi32>
    %c192_i32 = arith.constant 192 : i32
    %23 = vector.broadcast %c192_i32 : i32 to vector<1x256xi32>
    %24 = arith.cmpi slt, %20, %23 : vector<1x256xi32>
    %25 = arith.andi %22, %24 : vector<1x256xi1>
    %cst_9 = arith.constant 1.000000e+00 : f32
    %cst_10 = arith.constant 5.000000e-01 : f32
    %26 = vector.broadcast %cst_9 : f32 to vector<1x256xf32>
    %27 = vector.broadcast %cst_10 : f32 to vector<1x256xf32>
    %28 = arith.select %25, %26, %27 : vector<1x256xi1>, vector<1x256xf32>
    %cst_11 = arith.constant 0.000000e+00 : f32
    %29 = vector.broadcast %cst_11 : f32 to vector<4x64xf32>
    %cst_12 = arith.constant 0.000000e+00 : f32
    %30 = vector.broadcast %cst_12 : f32 to vector<4x64xf32>
    %31 = vector.extract_strided_slice %19 {offsets = [0, 0], sizes = [4, 256], strides = [1, 1]} : vector<32x256xf32> to vector<4x256xf32>
    %cst_13 = arith.constant dense<0.000000e+00> : vector<4x256xf32>
    %32 = tpu.matmul %29, %2, %cst_13 {dimension_numbers = #tpu.dot_dimension_numbers<[1], [0], [0], [1], [0, 0, 1, 1], [], []>} : vector<4x64xf32>, vector<64x256xf32>, vector<4x256xf32> -> vector<4x256xf32>
    %33 = arith.addf %31, %32 : vector<4x256xf32>
    %34 = vector.broadcast %28 : vector<1x256xf32> to vector<4x256xf32>
    %35 = arith.mulf %33, %34 : vector<4x256xf32>
    %36 = math.tanh %35 : vector<4x256xf32>
    %cst_14 = arith.constant 5.000000e-01 : f32
    %37 = vector.broadcast %cst_14 : f32 to vector<4x256xf32>
    %38 = arith.mulf %37, %36 : vector<4x256xf32>
    %cst_15 = arith.constant 5.000000e-01 : f32
    %39 = vector.broadcast %cst_15 : f32 to vector<4x256xf32>
    %40 = arith.addf %38, %39 : vector<4x256xf32>
    %41 = vector.shape_cast %25 : vector<1x256xi1> to vector<1x256xi1>
    %42 = vector.broadcast %41 : vector<1x256xi1> to vector<4x256xi1>
    %43 = arith.select %42, %36, %40 : vector<4x256xi1>, vector<4x256xf32>
    %44 = vector.extract_strided_slice %43 {offsets = [0, 64], sizes = [4, 64], strides = [1, 1]} : vector<4x256xf32> to vector<4x64xf32>
    %45 = arith.mulf %44, %30 : vector<4x64xf32>
    %46 = vector.extract_strided_slice %43 {offsets = [0, 0], sizes = [4, 64], strides = [1, 1]} : vector<4x256xf32> to vector<4x64xf32>
    %47 = vector.extract_strided_slice %43 {offsets = [0, 128], sizes = [4, 64], strides = [1, 1]} : vector<4x256xf32> to vector<4x64xf32>
    %48 = arith.mulf %46, %47 : vector<4x64xf32>
    %49 = arith.addf %45, %48 : vector<4x64xf32>
    %50 = vector.extract_strided_slice %43 {offsets = [0, 192], sizes = [4, 64], strides = [1, 1]} : vector<4x256xf32> to vector<4x64xf32>
    %51 = math.tanh %49 : vector<4x64xf32>
    %52 = arith.mulf %50, %51 : vector<4x64xf32>
    %c0_16 = arith.constant 0 : index
    %c0_17 = arith.constant 0 : index
    %c0_18 = arith.constant 0 : index
    %53 = vector.load %arg3[%c0_16, %c0_17, %c0_18] : memref<8x4x64xf32, #tpu.memory_space<vmem>>, vector<1x4x64xf32>
    %54 = vector.shape_cast %53 : vector<1x4x64xf32> to vector<4x64xf32>
    %55 = vector.shape_cast %52 : vector<4x64xf32> to vector<1x4x64xf32>
    tpu.vector_store %arg3[%c0_16, %c0_17, %c0_18], %55 {strides = array<i32>} : memref<8x4x64xf32, #tpu.memory_space<vmem>>, vector<1x4x64xf32>,
    %56 = vector.extract_strided_slice %19 {offsets = [4, 0], sizes = [4, 256], strides = [1, 1]} : vector<32x256xf32> to vector<4x256xf32>
    %cst_19 = arith.constant dense<0.000000e+00> : vector<4x256xf32>
    %57 = tpu.matmul %52, %2, %cst_19 {dimension_numbers = #tpu.dot_dimension_numbers<[1], [0], [0], [1], [0, 0, 1, 1], [], []>} : vector<4x64xf32>, vector<64x256xf32>, vector<4x256xf32> -> vector<4x256xf32>
    %58 = arith.addf %56, %57 : vector<4x256xf32>
    %59 = vector.broadcast %28 : vector<1x256xf32> to vector<4x256xf32>
    %60 = arith.mulf %58, %59 : vector<4x256xf32>
    %61 = math.tanh %60 : vector<4x256xf32>
    %cst_20 = arith.constant 5.000000e-01 : f32
    %62 = vector.broadcast %cst_20 : f32 to vector<4x256xf32>
    %63 = arith.mulf %62, %61 : vector<4x256xf32>
    %cst_21 = arith.constant 5.000000e-01 : f32
    %64 = vector.broadcast %cst_21 : f32 to vector<4x256xf32>
    %65 = arith.addf %63, %64 : vector<4x256xf32>
    %66 = vector.shape_cast %25 : vector<1x256xi1> to vector<1x256xi1>
    %67 = vector.broadcast %66 : vector<1x256xi1> to vector<4x256xi1>
    %68 = arith.select %67, %61, %65 : vector<4x256xi1>, vector<4x256xf32>
    %69 = vector.extract_strided_slice %68 {offsets = [0, 64], sizes = [4, 64], strides = [1, 1]} : vector<4x256xf32> to vector<4x64xf32>
    %70 = arith.mulf %69, %49 : vector<4x64xf32>
    %71 = vector.extract_strided_slice %68 {offsets = [0, 0], sizes = [4, 64], strides = [1, 1]} : vector<4x256xf32> to vector<4x64xf32>
    %72 = vector.extract_strided_slice %68 {offsets = [0, 128], sizes = [4, 64], strides = [1, 1]} : vector<4x256xf32> to vector<4x64xf32>
    %73 = arith.mulf %71, %72 : vector<4x64xf32>
    %74 = arith.addf %70, %73 : vector<4x64xf32>
    %75 = vector.extract_strided_slice %68 {offsets = [0, 192], sizes = [4, 64], strides = [1, 1]} : vector<4x256xf32> to vector<4x64xf32>
    %76 = math.tanh %74 : vector<4x64xf32>
    %77 = arith.mulf %75, %76 : vector<4x64xf32>
    %c1 = arith.constant 1 : index
    %c0_22 = arith.constant 0 : index
    %c0_23 = arith.constant 0 : index
    %78 = vector.load %arg3[%c1, %c0_22, %c0_23] : memref<8x4x64xf32, #tpu.memory_space<vmem>>, vector<1x4x64xf32>
    %79 = vector.shape_cast %78 : vector<1x4x64xf32> to vector<4x64xf32>
    %80 = vector.shape_cast %77 : vector<4x64xf32> to vector<1x4x64xf32>
    tpu.vector_store %arg3[%c1, %c0_22, %c0_23], %80 {strides = array<i32>} : memref<8x4x64xf32, #tpu.memory_space<vmem>>, vector<1x4x64xf32>,
    %81 = vector.extract_strided_slice %19 {offsets = [8, 0], sizes = [4, 256], strides = [1, 1]} : vector<32x256xf32> to vector<4x256xf32>
    %cst_24 = arith.constant dense<0.000000e+00> : vector<4x256xf32>
    %82 = tpu.matmul %77, %2, %cst_24 {dimension_numbers = #tpu.dot_dimension_numbers<[1], [0], [0], [1], [0, 0, 1, 1], [], []>} : vector<4x64xf32>, vector<64x256xf32>, vector<4x256xf32> -> vector<4x256xf32>
    %83 = arith.addf %81, %82 : vector<4x256xf32>
    %84 = vector.broadcast %28 : vector<1x256xf32> to vector<4x256xf32>
    %85 = arith.mulf %83, %84 : vector<4x256xf32>
    %86 = math.tanh %85 : vector<4x256xf32>
    %cst_25 = arith.constant 5.000000e-01 : f32
    %87 = vector.broadcast %cst_25 : f32 to vector<4x256xf32>
    %88 = arith.mulf %87, %86 : vector<4x256xf32>
    %cst_26 = arith.constant 5.000000e-01 : f32
    %89 = vector.broadcast %cst_26 : f32 to vector<4x256xf32>
    %90 = arith.addf %88, %89 : vector<4x256xf32>
    %91 = vector.shape_cast %25 : vector<1x256xi1> to vector<1x256xi1>
    %92 = vector.broadcast %91 : vector<1x256xi1> to vector<4x256xi1>
    %93 = arith.select %92, %86, %90 : vector<4x256xi1>, vector<4x256xf32>
    %94 = vector.extract_strided_slice %93 {offsets = [0, 64], sizes = [4, 64], strides = [1, 1]} : vector<4x256xf32> to vector<4x64xf32>
    %95 = arith.mulf %94, %74 : vector<4x64xf32>
    %96 = vector.extract_strided_slice %93 {offsets = [0, 0], sizes = [4, 64], strides = [1, 1]} : vector<4x256xf32> to vector<4x64xf32>
    %97 = vector.extract_strided_slice %93 {offsets = [0, 128], sizes = [4, 64], strides = [1, 1]} : vector<4x256xf32> to vector<4x64xf32>
    %98 = arith.mulf %96, %97 : vector<4x64xf32>
    %99 = arith.addf %95, %98 : vector<4x64xf32>
    %100 = vector.extract_strided_slice %93 {offsets = [0, 192], sizes = [4, 64], strides = [1, 1]} : vector<4x256xf32> to vector<4x64xf32>
    %101 = math.tanh %99 : vector<4x64xf32>
    %102 = arith.mulf %100, %101 : vector<4x64xf32>
    %c2 = arith.constant 2 : index
    %c0_27 = arith.constant 0 : index
    %c0_28 = arith.constant 0 : index
    %103 = vector.load %arg3[%c2, %c0_27, %c0_28] : memref<8x4x64xf32, #tpu.memory_space<vmem>>, vector<1x4x64xf32>
    %104 = vector.shape_cast %103 : vector<1x4x64xf32> to vector<4x64xf32>
    %105 = vector.shape_cast %102 : vector<4x64xf32> to vector<1x4x64xf32>
    tpu.vector_store %arg3[%c2, %c0_27, %c0_28], %105 {strides = array<i32>} : memref<8x4x64xf32, #tpu.memory_space<vmem>>, vector<1x4x64xf32>,
    %106 = vector.extract_strided_slice %19 {offsets = [12, 0], sizes = [4, 256], strides = [1, 1]} : vector<32x256xf32> to vector<4x256xf32>
    %cst_29 = arith.constant dense<0.000000e+00> : vector<4x256xf32>
    %107 = tpu.matmul %102, %2, %cst_29 {dimension_numbers = #tpu.dot_dimension_numbers<[1], [0], [0], [1], [0, 0, 1, 1], [], []>} : vector<4x64xf32>, vector<64x256xf32>, vector<4x256xf32> -> vector<4x256xf32>
    %108 = arith.addf %106, %107 : vector<4x256xf32>
    %109 = vector.broadcast %28 : vector<1x256xf32> to vector<4x256xf32>
    %110 = arith.mulf %108, %109 : vector<4x256xf32>
    %111 = math.tanh %110 : vector<4x256xf32>
    %cst_30 = arith.constant 5.000000e-01 : f32
    %112 = vector.broadcast %cst_30 : f32 to vector<4x256xf32>
    %113 = arith.mulf %112, %111 : vector<4x256xf32>
    %cst_31 = arith.constant 5.000000e-01 : f32
    %114 = vector.broadcast %cst_31 : f32 to vector<4x256xf32>
    %115 = arith.addf %113, %114 : vector<4x256xf32>
    %116 = vector.shape_cast %25 : vector<1x256xi1> to vector<1x256xi1>
    %117 = vector.broadcast %116 : vector<1x256xi1> to vector<4x256xi1>
    %118 = arith.select %117, %111, %115 : vector<4x256xi1>, vector<4x256xf32>
    %119 = vector.extract_strided_slice %118 {offsets = [0, 64], sizes = [4, 64], strides = [1, 1]} : vector<4x256xf32> to vector<4x64xf32>
    %120 = arith.mulf %119, %99 : vector<4x64xf32>
    %121 = vector.extract_strided_slice %118 {offsets = [0, 0], sizes = [4, 64], strides = [1, 1]} : vector<4x256xf32> to vector<4x64xf32>
    %122 = vector.extract_strided_slice %118 {offsets = [0, 128], sizes = [4, 64], strides = [1, 1]} : vector<4x256xf32> to vector<4x64xf32>
    %123 = arith.mulf %121, %122 : vector<4x64xf32>
    %124 = arith.addf %120, %123 : vector<4x64xf32>
    %125 = vector.extract_strided_slice %118 {offsets = [0, 192], sizes = [4, 64], strides = [1, 1]} : vector<4x256xf32> to vector<4x64xf32>
    %126 = math.tanh %124 : vector<4x64xf32>
    %127 = arith.mulf %125, %126 : vector<4x64xf32>
    %c3 = arith.constant 3 : index
    %c0_32 = arith.constant 0 : index
    %c0_33 = arith.constant 0 : index
    %128 = vector.load %arg3[%c3, %c0_32, %c0_33] : memref<8x4x64xf32, #tpu.memory_space<vmem>>, vector<1x4x64xf32>
    %129 = vector.shape_cast %128 : vector<1x4x64xf32> to vector<4x64xf32>
    %130 = vector.shape_cast %127 : vector<4x64xf32> to vector<1x4x64xf32>
    tpu.vector_store %arg3[%c3, %c0_32, %c0_33], %130 {strides = array<i32>} : memref<8x4x64xf32, #tpu.memory_space<vmem>>, vector<1x4x64xf32>,
    %131 = vector.extract_strided_slice %19 {offsets = [16, 0], sizes = [4, 256], strides = [1, 1]} : vector<32x256xf32> to vector<4x256xf32>
    %cst_34 = arith.constant dense<0.000000e+00> : vector<4x256xf32>
    %132 = tpu.matmul %127, %2, %cst_34 {dimension_numbers = #tpu.dot_dimension_numbers<[1], [0], [0], [1], [0, 0, 1, 1], [], []>} : vector<4x64xf32>, vector<64x256xf32>, vector<4x256xf32> -> vector<4x256xf32>
    %133 = arith.addf %131, %132 : vector<4x256xf32>
    %134 = vector.broadcast %28 : vector<1x256xf32> to vector<4x256xf32>
    %135 = arith.mulf %133, %134 : vector<4x256xf32>
    %136 = math.tanh %135 : vector<4x256xf32>
    %cst_35 = arith.constant 5.000000e-01 : f32
    %137 = vector.broadcast %cst_35 : f32 to vector<4x256xf32>
    %138 = arith.mulf %137, %136 : vector<4x256xf32>
    %cst_36 = arith.constant 5.000000e-01 : f32
    %139 = vector.broadcast %cst_36 : f32 to vector<4x256xf32>
    %140 = arith.addf %138, %139 : vector<4x256xf32>
    %141 = vector.shape_cast %25 : vector<1x256xi1> to vector<1x256xi1>
    %142 = vector.broadcast %141 : vector<1x256xi1> to vector<4x256xi1>
    %143 = arith.select %142, %136, %140 : vector<4x256xi1>, vector<4x256xf32>
    %144 = vector.extract_strided_slice %143 {offsets = [0, 64], sizes = [4, 64], strides = [1, 1]} : vector<4x256xf32> to vector<4x64xf32>
    %145 = arith.mulf %144, %124 : vector<4x64xf32>
    %146 = vector.extract_strided_slice %143 {offsets = [0, 0], sizes = [4, 64], strides = [1, 1]} : vector<4x256xf32> to vector<4x64xf32>
    %147 = vector.extract_strided_slice %143 {offsets = [0, 128], sizes = [4, 64], strides = [1, 1]} : vector<4x256xf32> to vector<4x64xf32>
    %148 = arith.mulf %146, %147 : vector<4x64xf32>
    %149 = arith.addf %145, %148 : vector<4x64xf32>
    %150 = vector.extract_strided_slice %143 {offsets = [0, 192], sizes = [4, 64], strides = [1, 1]} : vector<4x256xf32> to vector<4x64xf32>
    %151 = math.tanh %149 : vector<4x64xf32>
    %152 = arith.mulf %150, %151 : vector<4x64xf32>
    %c4 = arith.constant 4 : index
    %c0_37 = arith.constant 0 : index
    %c0_38 = arith.constant 0 : index
    %153 = vector.load %arg3[%c4, %c0_37, %c0_38] : memref<8x4x64xf32, #tpu.memory_space<vmem>>, vector<1x4x64xf32>
    %154 = vector.shape_cast %153 : vector<1x4x64xf32> to vector<4x64xf32>
    %155 = vector.shape_cast %152 : vector<4x64xf32> to vector<1x4x64xf32>
    tpu.vector_store %arg3[%c4, %c0_37, %c0_38], %155 {strides = array<i32>} : memref<8x4x64xf32, #tpu.memory_space<vmem>>, vector<1x4x64xf32>,
    %156 = vector.extract_strided_slice %19 {offsets = [20, 0], sizes = [4, 256], strides = [1, 1]} : vector<32x256xf32> to vector<4x256xf32>
    %cst_39 = arith.constant dense<0.000000e+00> : vector<4x256xf32>
    %157 = tpu.matmul %152, %2, %cst_39 {dimension_numbers = #tpu.dot_dimension_numbers<[1], [0], [0], [1], [0, 0, 1, 1], [], []>} : vector<4x64xf32>, vector<64x256xf32>, vector<4x256xf32> -> vector<4x256xf32>
    %158 = arith.addf %156, %157 : vector<4x256xf32>
    %159 = vector.broadcast %28 : vector<1x256xf32> to vector<4x256xf32>
    %160 = arith.mulf %158, %159 : vector<4x256xf32>
    %161 = math.tanh %160 : vector<4x256xf32>
    %cst_40 = arith.constant 5.000000e-01 : f32
    %162 = vector.broadcast %cst_40 : f32 to vector<4x256xf32>
    %163 = arith.mulf %162, %161 : vector<4x256xf32>
    %cst_41 = arith.constant 5.000000e-01 : f32
    %164 = vector.broadcast %cst_41 : f32 to vector<4x256xf32>
    %165 = arith.addf %163, %164 : vector<4x256xf32>
    %166 = vector.shape_cast %25 : vector<1x256xi1> to vector<1x256xi1>
    %167 = vector.broadcast %166 : vector<1x256xi1> to vector<4x256xi1>
    %168 = arith.select %167, %161, %165 : vector<4x256xi1>, vector<4x256xf32>
    %169 = vector.extract_strided_slice %168 {offsets = [0, 64], sizes = [4, 64], strides = [1, 1]} : vector<4x256xf32> to vector<4x64xf32>
    %170 = arith.mulf %169, %149 : vector<4x64xf32>
    %171 = vector.extract_strided_slice %168 {offsets = [0, 0], sizes = [4, 64], strides = [1, 1]} : vector<4x256xf32> to vector<4x64xf32>
    %172 = vector.extract_strided_slice %168 {offsets = [0, 128], sizes = [4, 64], strides = [1, 1]} : vector<4x256xf32> to vector<4x64xf32>
    %173 = arith.mulf %171, %172 : vector<4x64xf32>
    %174 = arith.addf %170, %173 : vector<4x64xf32>
    %175 = vector.extract_strided_slice %168 {offsets = [0, 192], sizes = [4, 64], strides = [1, 1]} : vector<4x256xf32> to vector<4x64xf32>
    %176 = math.tanh %174 : vector<4x64xf32>
    %177 = arith.mulf %175, %176 : vector<4x64xf32>
    %c5 = arith.constant 5 : index
    %c0_42 = arith.constant 0 : index
    %c0_43 = arith.constant 0 : index
    %178 = vector.load %arg3[%c5, %c0_42, %c0_43] : memref<8x4x64xf32, #tpu.memory_space<vmem>>, vector<1x4x64xf32>
    %179 = vector.shape_cast %178 : vector<1x4x64xf32> to vector<4x64xf32>
    %180 = vector.shape_cast %177 : vector<4x64xf32> to vector<1x4x64xf32>
    tpu.vector_store %arg3[%c5, %c0_42, %c0_43], %180 {strides = array<i32>} : memref<8x4x64xf32, #tpu.memory_space<vmem>>, vector<1x4x64xf32>,
    %181 = vector.extract_strided_slice %19 {offsets = [24, 0], sizes = [4, 256], strides = [1, 1]} : vector<32x256xf32> to vector<4x256xf32>
    %cst_44 = arith.constant dense<0.000000e+00> : vector<4x256xf32>
    %182 = tpu.matmul %177, %2, %cst_44 {dimension_numbers = #tpu.dot_dimension_numbers<[1], [0], [0], [1], [0, 0, 1, 1], [], []>} : vector<4x64xf32>, vector<64x256xf32>, vector<4x256xf32> -> vector<4x256xf32>
    %183 = arith.addf %181, %182 : vector<4x256xf32>
    %184 = vector.broadcast %28 : vector<1x256xf32> to vector<4x256xf32>
    %185 = arith.mulf %183, %184 : vector<4x256xf32>
    %186 = math.tanh %185 : vector<4x256xf32>
    %cst_45 = arith.constant 5.000000e-01 : f32
    %187 = vector.broadcast %cst_45 : f32 to vector<4x256xf32>
    %188 = arith.mulf %187, %186 : vector<4x256xf32>
    %cst_46 = arith.constant 5.000000e-01 : f32
    %189 = vector.broadcast %cst_46 : f32 to vector<4x256xf32>
    %190 = arith.addf %188, %189 : vector<4x256xf32>
    %191 = vector.shape_cast %25 : vector<1x256xi1> to vector<1x256xi1>
    %192 = vector.broadcast %191 : vector<1x256xi1> to vector<4x256xi1>
    %193 = arith.select %192, %186, %190 : vector<4x256xi1>, vector<4x256xf32>
    %194 = vector.extract_strided_slice %193 {offsets = [0, 64], sizes = [4, 64], strides = [1, 1]} : vector<4x256xf32> to vector<4x64xf32>
    %195 = arith.mulf %194, %174 : vector<4x64xf32>
    %196 = vector.extract_strided_slice %193 {offsets = [0, 0], sizes = [4, 64], strides = [1, 1]} : vector<4x256xf32> to vector<4x64xf32>
    %197 = vector.extract_strided_slice %193 {offsets = [0, 128], sizes = [4, 64], strides = [1, 1]} : vector<4x256xf32> to vector<4x64xf32>
    %198 = arith.mulf %196, %197 : vector<4x64xf32>
    %199 = arith.addf %195, %198 : vector<4x64xf32>
    %200 = vector.extract_strided_slice %193 {offsets = [0, 192], sizes = [4, 64], strides = [1, 1]} : vector<4x256xf32> to vector<4x64xf32>
    %201 = math.tanh %199 : vector<4x64xf32>
    %202 = arith.mulf %200, %201 : vector<4x64xf32>
    %c6 = arith.constant 6 : index
    %c0_47 = arith.constant 0 : index
    %c0_48 = arith.constant 0 : index
    %203 = vector.load %arg3[%c6, %c0_47, %c0_48] : memref<8x4x64xf32, #tpu.memory_space<vmem>>, vector<1x4x64xf32>
    %204 = vector.shape_cast %203 : vector<1x4x64xf32> to vector<4x64xf32>
    %205 = vector.shape_cast %202 : vector<4x64xf32> to vector<1x4x64xf32>
    tpu.vector_store %arg3[%c6, %c0_47, %c0_48], %205 {strides = array<i32>} : memref<8x4x64xf32, #tpu.memory_space<vmem>>, vector<1x4x64xf32>,
    %206 = vector.extract_strided_slice %19 {offsets = [28, 0], sizes = [4, 256], strides = [1, 1]} : vector<32x256xf32> to vector<4x256xf32>
    %cst_49 = arith.constant dense<0.000000e+00> : vector<4x256xf32>
    %207 = tpu.matmul %202, %2, %cst_49 {dimension_numbers = #tpu.dot_dimension_numbers<[1], [0], [0], [1], [0, 0, 1, 1], [], []>} : vector<4x64xf32>, vector<64x256xf32>, vector<4x256xf32> -> vector<4x256xf32>
    %208 = arith.addf %206, %207 : vector<4x256xf32>
    %209 = vector.broadcast %28 : vector<1x256xf32> to vector<4x256xf32>
    %210 = arith.mulf %208, %209 : vector<4x256xf32>
    %211 = math.tanh %210 : vector<4x256xf32>
    %cst_50 = arith.constant 5.000000e-01 : f32
    %212 = vector.broadcast %cst_50 : f32 to vector<4x256xf32>
    %213 = arith.mulf %212, %211 : vector<4x256xf32>
    %cst_51 = arith.constant 5.000000e-01 : f32
    %214 = vector.broadcast %cst_51 : f32 to vector<4x256xf32>
    %215 = arith.addf %213, %214 : vector<4x256xf32>
    %216 = vector.shape_cast %25 : vector<1x256xi1> to vector<1x256xi1>
    %217 = vector.broadcast %216 : vector<1x256xi1> to vector<4x256xi1>
    %218 = arith.select %217, %211, %215 : vector<4x256xi1>, vector<4x256xf32>
    %219 = vector.extract_strided_slice %218 {offsets = [0, 64], sizes = [4, 64], strides = [1, 1]} : vector<4x256xf32> to vector<4x64xf32>
    %220 = arith.mulf %219, %199 : vector<4x64xf32>
    %221 = vector.extract_strided_slice %218 {offsets = [0, 0], sizes = [4, 64], strides = [1, 1]} : vector<4x256xf32> to vector<4x64xf32>
    %222 = vector.extract_strided_slice %218 {offsets = [0, 128], sizes = [4, 64], strides = [1, 1]} : vector<4x256xf32> to vector<4x64xf32>
    %223 = arith.mulf %221, %222 : vector<4x64xf32>
    %224 = arith.addf %220, %223 : vector<4x64xf32>
    %225 = vector.extract_strided_slice %218 {offsets = [0, 192], sizes = [4, 64], strides = [1, 1]} : vector<4x256xf32> to vector<4x64xf32>
    %226 = math.tanh %224 : vector<4x64xf32>
    %227 = arith.mulf %225, %226 : vector<4x64xf32>
    %c7 = arith.constant 7 : index
    %c0_52 = arith.constant 0 : index
    %c0_53 = arith.constant 0 : index
    %228 = vector.load %arg3[%c7, %c0_52, %c0_53] : memref<8x4x64xf32, #tpu.memory_space<vmem>>, vector<1x4x64xf32>
    %229 = vector.shape_cast %228 : vector<1x4x64xf32> to vector<4x64xf32>
    %230 = vector.shape_cast %227 : vector<4x64xf32> to vector<1x4x64xf32>
    tpu.vector_store %arg3[%c7, %c0_52, %c0_53], %230 {strides = array<i32>} : memref<8x4x64xf32, #tpu.memory_space<vmem>>, vector<1x4x64xf32>,
    %c0_54 = arith.constant 0 : index
    %c0_55 = arith.constant 0 : index
    %c0_56 = arith.constant 0 : index
    %231 = vector.load %arg3[%c0_54, %c0_55, %c0_56] : memref<8x4x64xf32, #tpu.memory_space<vmem>>, vector<8x4x64xf32>
    %232 = vector.shape_cast %231 : vector<8x4x64xf32> to vector<32x64xf32>
    %cst_57 = arith.constant dense<0.000000e+00> : vector<32x64xf32>
    %233 = tpu.matmul %232, %3, %cst_57 {dimension_numbers = #tpu.dot_dimension_numbers<[1], [0], [0], [1], [0, 0, 1, 1], [], []>} : vector<32x64xf32>, vector<64x64xf32>, vector<32x64xf32> -> vector<32x64xf32>
    %234 = vector.broadcast %7 : vector<1x64xf32> to vector<32x64xf32>
    %235 = arith.addf %233, %234 : vector<32x64xf32>
    %236 = math.tanh %235 : vector<32x64xf32>
    %237 = vector.broadcast %8 : vector<1x64xf32> to vector<32x64xf32>
    %238 = arith.mulf %236, %237 : vector<32x64xf32>
    %239 = vector.extract_strided_slice %238 {offsets = [0, 0], sizes = [32, 32], strides = [1, 1]} : vector<32x64xf32> to vector<32x32xf32>
    %cst_58 = arith.constant dense<0.000000e+00> : vector<32xf32>
    %240 = vector.multi_reduction <add>, %239, %cst_58 [1] : vector<32x32xf32> to vector<32xf32>
    %241 = vector.shape_cast %240 : vector<32xf32> to vector<32x1xf32>
    %242 = vector.shape_cast %241 : vector<32x1xf32> to vector<8x4x1xf32>
    %243 = vector.extract_strided_slice %238 {offsets = [0, 32], sizes = [32, 32], strides = [1, 1]} : vector<32x64xf32> to vector<32x32xf32>
    %cst_59 = arith.constant dense<0.000000e+00> : vector<32xf32>
    %244 = vector.multi_reduction <add>, %243, %cst_59 [1] : vector<32x32xf32> to vector<32xf32>
    %245 = vector.shape_cast %244 : vector<32xf32> to vector<32x1xf32>
    %246 = vector.shape_cast %245 : vector<32x1xf32> to vector<8x4x1xf32>
    %cst_60 = arith.constant dense<0xFF800000> : vector<8x1xf32>
    %247 = vector.multi_reduction <maximumf>, %242, %cst_60 [1] : vector<8x4x1xf32> to vector<8x1xf32>
    %248 = vector.shape_cast %247 : vector<8x1xf32> to vector<8x1x1xf32>
    %249 = vector.broadcast %248 : vector<8x1x1xf32> to vector<8x4x1xf32>
    %250 = arith.subf %242, %249 : vector<8x4x1xf32>
    %251 = math.exp %250 : vector<8x4x1xf32>
    %cst_61 = arith.constant dense<0.000000e+00> : vector<8x1xf32>
    %252 = vector.multi_reduction <add>, %251, %cst_61 [1] : vector<8x4x1xf32> to vector<8x1xf32>
    %253 = vector.shape_cast %252 : vector<8x1xf32> to vector<8x1x1xf32>
    %254 = vector.broadcast %253 : vector<8x1x1xf32> to vector<8x4x1xf32>
    %255 = arith.divf %251, %254 : vector<8x4x1xf32>
    %256 = vector.extract_strided_slice %231 {offsets = [0, 0, 0], sizes = [8, 4, 32], strides = [1, 1, 1]} : vector<8x4x64xf32> to vector<8x4x32xf32>
    %257 = vector.broadcast %255 : vector<8x4x1xf32> to vector<8x4x32xf32>
    %258 = arith.mulf %257, %256 : vector<8x4x32xf32>
    %cst_62 = arith.constant dense<0.000000e+00> : vector<8x32xf32>
    %259 = vector.multi_reduction <add>, %258, %cst_62 [1] : vector<8x4x32xf32> to vector<8x32xf32>
    %cst_63 = arith.constant dense<0xFF800000> : vector<8x1xf32>
    %260 = vector.multi_reduction <maximumf>, %246, %cst_63 [1] : vector<8x4x1xf32> to vector<8x1xf32>
    %261 = vector.shape_cast %260 : vector<8x1xf32> to vector<8x1x1xf32>
    %262 = vector.broadcast %261 : vector<8x1x1xf32> to vector<8x4x1xf32>
    %263 = arith.subf %246, %262 : vector<8x4x1xf32>
    %264 = math.exp %263 : vector<8x4x1xf32>
    %cst_64 = arith.constant dense<0.000000e+00> : vector<8x1xf32>
    %265 = vector.multi_reduction <add>, %264, %cst_64 [1] : vector<8x4x1xf32> to vector<8x1xf32>
    %266 = vector.shape_cast %265 : vector<8x1xf32> to vector<8x1x1xf32>
    %267 = vector.broadcast %266 : vector<8x1x1xf32> to vector<8x4x1xf32>
    %268 = arith.divf %264, %267 : vector<8x4x1xf32>
    %269 = vector.extract_strided_slice %231 {offsets = [0, 0, 32], sizes = [8, 4, 32], strides = [1, 1, 1]} : vector<8x4x64xf32> to vector<8x4x32xf32>
    %270 = vector.broadcast %268 : vector<8x4x1xf32> to vector<8x4x32xf32>
    %271 = arith.mulf %270, %269 : vector<8x4x32xf32>
    %cst_65 = arith.constant dense<0.000000e+00> : vector<8x32xf32>
    %272 = vector.multi_reduction <add>, %271, %cst_65 [1] : vector<8x4x32xf32> to vector<8x32xf32>
    %273 = vector.extract_strided_slice %9 {offsets = [0, 0], sizes = [1, 32], strides = [1, 1]} : vector<1x64xf32> to vector<1x32xf32>
    %274 = vector.broadcast %273 : vector<1x32xf32> to vector<8x32xf32>
    %275 = arith.mulf %259, %274 : vector<8x32xf32>
    %cst_66 = arith.constant dense<0.000000e+00> : vector<8xf32>
    %276 = vector.multi_reduction <add>, %275, %cst_66 [1] : vector<8x32xf32> to vector<8xf32>
    %277 = vector.shape_cast %276 : vector<8xf32> to vector<8x1xf32>
    %278 = vector.extract_strided_slice %9 {offsets = [0, 32], sizes = [1, 32], strides = [1, 1]} : vector<1x64xf32> to vector<1x32xf32>
    %279 = vector.broadcast %278 : vector<1x32xf32> to vector<8x32xf32>
    %280 = arith.mulf %272, %279 : vector<8x32xf32>
    %cst_67 = arith.constant dense<0.000000e+00> : vector<8xf32>
    %281 = vector.multi_reduction <add>, %280, %cst_67 [1] : vector<8x32xf32> to vector<8xf32>
    %282 = vector.shape_cast %281 : vector<8xf32> to vector<8x1xf32>
    %283 = arith.addf %277, %282 : vector<8x1xf32>
    %284 = vector.broadcast %10 : vector<1x1xf32> to vector<8x1xf32>
    %285 = arith.addf %283, %284 : vector<8x1xf32>
    %286 = vector.shape_cast %285 : vector<8x1xf32> to vector<1x8xf32>
    %c0_68 = arith.constant 0 : index
    %c0_69 = arith.constant 0 : index
    %287 = vector.load %arg2[%c0_68, %c0_69] : memref<1x8xf32, #tpu.memory_space<vmem>>, vector<1x8xf32>
    tpu.vector_store %arg2[%c0_68, %c0_69], %286 {strides = array<i32>} : memref<1x8xf32, #tpu.memory_space<vmem>>, vector<1x8xf32>,
    return
  }
}

</mosaic_0001>

<bundles_post_ra>
// kernel: lstm_model_forward.1
= control target key start
LH: loop header
LB: loop body
LE: loop exit
PB: predicated region body
PF: predicated region fallthrough
CT: control target
= control target key end

     0   :  { %7 = vsyncpa [#allocation4], 0  ;;  %s2914_s0 = inlined_call_operand.vmem [shape: f32[32,16], index: 0, kind: input, shape index: {}]   ;;  %s2915_s1 = inlined_call_operand.hbm [shape: f32[184,256], index: 1, kind: input, shape index: {}]   ;;  %s2916_s2 = inlined_call_operand.hbm [shape: f32[1,8], index: 2, kind: output, shape index: {}]  }
   0x1   :  { %8 = vsyncpa [#allocation5], 0  ;;  %s15_s11 = sshll.u32 %s2915_s1, 4  ;;  %s2016_s12 = smov [#allocation3]   ;;  %s16_s11 = int_to_ptr.hbm [resolvable:$true] %s15_s11 }
   0x2   :  { %s17_s13 = sshll.u32 %s2016_s12, 4  ;;  %s2017_s14 = smov 256   ;;  %s18_s13 = int_to_ptr.vmem [resolvable:$true] %s17_s13 }
   0x3   :  { %s2018_s15 = smov 16  }
   0x4   :  { %23 = dma.hbm_to_vmem [thread:$0]  %s16_s11, 5888, %s18_s13, [#allocation4], %s2017_s14, %s2017_s14, %s2018_s15  }
   0x5   :  { %2012 = dma.done.wait [#allocation4], 5888  }
   0x6   :  { %2013 = vsyncadd [#allocation4], 4294961408  ;;  %v29_v0 = vld [vmem:[#allocation3 + $0x10] sm:$0xff]  ;;  %v28_v1 = vld [vmem:[#allocation3] sm:$0xff]  ;;  %vm69_vm0 = vcmask 130048   ;;  %vm117_vm1 = vcmask 261120   ;;  %v188_v57 = vlaneseq }
   0x7   :  { %96 = vmatpush.msra.mxu0 %v29_v0  ;;  %v64_v2 = vld [vmem:[%s2914_s0] sm:$0xff]  ;;  %v36_v3 = vld [vmem:[#allocation3 + $0x50] sm:$0xff]  ;;  %v65_v5 = vld [vmem:[%s2914_s0 + $0x8] sm:$0xff]  ;;  %v2019_v44 = vmov 0.0   ;;  %vm272_vm3 = vcmask 519168   ;;  %vm199_vm4 = vcmask 523264  }
   0x8   :  { %v37_v4 = vld [vmem:[#allocation3 + $0x58] sm:$0xff]  ;;  %142 = vmatpush.msra.mxu1 %v36_v3  ;;  %v66_v6 = vld [vmem:[%s2914_s0 + $0x10] sm:$0xff]  ;;  %v67_v7 = vld [vmem:[%s2914_s0 + $0x18] sm:$0xff]  ;;  %v2197_v58 = vand.u32 127, %v188_v57  ;;  %s2021_s0 = smov 64   ;;  %vm351_vm5 = vcmask 523268  }
   0x9   :  { %97 = vmatpush.msra.mxu0 %v28_v1  ;;  %171 = vmatpush.msra.mxu2 %v37_v4  ;;  %v34_v8 = vld [vmem:[#allocation3 + $0x40] sm:$0xff]  ;;  %v35_v9 = vld [vmem:[#allocation3 + $0x48] sm:$0xff]  ;;  %v32_v10 = vld [vmem:[#allocation3 + $0x30] sm:$0xff]  ;;  %s2022_s23 = smov 96   ;;  %vm1022_vm6 = vcmask 1043456   ;;  %vm1287_vm15 = vcmask 257024  }
   0xa   :  { %1796 = vmatmul.msk.f32.vlgmr.msra.gmra.mxu0 %vm69_vm0, %v64_v2  ;;  %1826 = vmatpush.msra.mxu3 %v37_v4  ;;  %v33_v11 = vld [vmem:[#allocation3 + $0x38] sm:$0xff]  ;;  %v30_v12 = vld [vmem:[#allocation3 + $0x20] sm:$0xff]  ;;  %v31_v13 = vld [vmem:[#allocation3 + $0x28] sm:$0xff]  ;;  %v2201_v61 = vadd.s32 128, %v2197_v58  ;;  %v2020_v2 = vmov 0.5   ;;  %s2026_s24 = smov [#allocation6]  }
   0xb   :  { %143 = vmatpush.msra.mxu1 %v34_v8  ;;  %172 = vmatpush.msra.mxu2 %v35_v9  ;;  %v2057_v14 = vld [vmem:[#allocation3 + $0xd0] sm:$0xff]  ;;  %v2062_v15 = vld [vmem:[#allocation3 + $0xc0] sm:$0xff]  ;;  %v2098_v24 = vld [vmem:[#allocation3 + $0xd8] sm:$0xff]  ;;  %s1784_s25 = sshll.u32 %s2026_s24, 4  ;;  %s1786_s28 = sshll.u32 %s2916_s2, 4  ;;  %s1785_s25 = int_to_ptr.vmem [resolvable:$true] %s1784_s25  ;;  %s1787_s28 = int_to_ptr.hbm [resolvable:$true] %s1786_s28 }
   0xc   :  { %1827 = vmatpush.msra.mxu3 %v35_v9  ;;  %284 = vmatpush.msrb.mxu0 %v2057_v14  ;;  %v2066_v16 = vld [vmem:[#allocation3 + $0xb0] sm:$0xff]  ;;  %v2071_v17 = vld [vmem:[#allocation3 + $0xa0] sm:$0xff]  ;;  %v2103_v25 = vld [vmem:[#allocation3 + $0xc8] sm:$0xff]  ;;  %vm194_vm2 = vcmp.lt.s32.totalorder %v2201_v61, 192 }
   0xd   :  { %144 = vmatpush.msra.mxu1 %v32_v10  ;;  %173 = vmatpush.msra.mxu2 %v33_v11  ;;  %v2075_v18 = vld [vmem:[#allocation3 + $0x90] sm:$0xff]  ;;  %v2081_v19 = vld [vmem:[#allocation3 + $0x80] sm:$0xff]  ;;  %v2107_v28 = vld [vmem:[#allocation3 + $0xb8] sm:$0xff]  ;;  %v2207_v3 = vsel %vm194_vm2, 1.0, %v2020_v2 }
   0xe   :  { %1828 = vmatpush.msra.mxu3 %v33_v11  ;;  %285 = vmatpush.msrb.mxu0 %v2062_v15  ;;  %v2086_v20 = vld [vmem:[#allocation3 + $0x160] sm:$0xff]  ;;  %v2088_v21 = vld [vmem:[#allocation3 + $0x70] sm:$0xff]  ;;  %v2111_v30 = vld [vmem:[#allocation3 + $0xa8] sm:$0xff] }
   0xf   :  { %145 = vmatpush.msra.mxu1 %v30_v12  ;;  %174 = vmatpush.msra.mxu2 %v31_v13  ;;  %v2093_v22 = vld [vmem:[#allocation3 + $0x60] sm:$0xff]  ;;  %v68_v23 = vperm.slane %v2086_v20, 0  ;;  %v2117_v31 = vld [vmem:[#allocation3 + $0x98] sm:$0xff]  ;;  %v2121_v32 = vld [vmem:[#allocation3 + $0x88] sm:$0xff]  ;;  %v2181_v46 = vperm.slane %v2086_v20, 1 }
  0x10   :  { %1829 = vmatpush.msra.mxu3 %v31_v13  ;;  %286 = vmatpush.msrb.mxu0 %v2066_v16  ;;  %v2126_v35 = vld [vmem:[#allocation3 + $0x78] sm:$0xff]  ;;  %v2131_v37 = vld [vmem:[#allocation3 + $0x68] sm:$0xff] }
  0x11   :  { %366 = vmatpush.msrb.mxu2 %v2057_v14  ;;  %304 = vmatpush.msrb.mxu1 %v2098_v24  ;;  %v63_v51 = vld [vmem:[#allocation3 + $0x168] sm:$0xff] }
  0x12   :  { %1797 = vmatmul.msk.f32.gmra.mxu0 %vm69_vm0, %v65_v5  ;;  %211 = vmatpush.msrb.mxu3 %v2057_v14  ;;  %v2189_v52 = vperm.slane %v63_v51, 1 }
  0x13   :  { %367 = vmatpush.msrb.mxu2 %v2062_v15  ;;  %287 = vmatpush.msrb.mxu0 %v2071_v17 }
  0x14   :  { %212 = vmatpush.msrb.mxu3 %v2062_v15  ;;  %305 = vmatpush.msrb.mxu1 %v2103_v25 }
  0x15   :  { %368 = vmatpush.msrb.mxu2 %v2066_v16  ;;  %288 = vmatpush.msrb.mxu0 %v2075_v18 }
  0x16   :  { %213 = vmatpush.msrb.mxu3 %v2066_v16  ;;  %306 = vmatpush.msrb.mxu1 %v2107_v28 }
  0x17   :  { %369 = vmatpush.msrb.mxu2 %v2071_v17  ;;  %289 = vmatpush.msrb.mxu0 %v2081_v19 }
  0x18   :  { %214 = vmatpush.msrb.mxu3 %v2071_v17  ;;  %307 = vmatpush.msrb.mxu1 %v2111_v30 }
  0x19   :  { %370 = vmatpush.msrb.mxu2 %v2075_v18  ;;  %290 = vmatpush.msrb.mxu0 %v2088_v21 }
  0x1a   :  { %1798 = vmatmul.msk.f32.gmra.mxu0 %vm69_vm0, %v66_v6  ;;  %215 = vmatpush.msrb.mxu3 %v2075_v18 }
  0x1b   :  { %371 = vmatpush.msrb.mxu2 %v2081_v19  ;;  %291 = vmatpush.msrb.mxu0 %v2093_v22 }
  0x1c   :  { %216 = vmatpush.msrb.mxu3 %v2081_v19  ;;  %308 = vmatpush.msrb.mxu1 %v2117_v31 }
  0x1d   :  { %372 = vmatpush.msrb.mxu2 %v2088_v21  ;;  %438 = vmatpush.msra.mxu0 %v2057_v14 }
  0x1e   :  { %217 = vmatpush.msrb.mxu3 %v2088_v21  ;;  %309 = vmatpush.msrb.mxu1 %v2121_v32 }
  0x1f   :  { %373 = vmatpush.msrb.mxu2 %v2093_v22  ;;  %439 = vmatpush.msra.mxu0 %v2062_v15 }
  0x20   :  { %218 = vmatpush.msrb.mxu3 %v2093_v22  ;;  %310 = vmatpush.msrb.mxu1 %v2126_v35 }
  0x21   :  { %440 = vmatpush.msra.mxu0 %v2066_v16 }
  0x22   :  { %1799 = vmatmul.msk.f32.gmra.mxu0 %vm69_vm0, %v67_v7  ;;  %311 = vmatpush.msrb.mxu1 %v2131_v37 }
  0x23   :  { %441 = vmatpush.msra.mxu0 %v2071_v17 }
  0x25   :  { %442 = vmatpush.msra.mxu0 %v2075_v18 }
  0x27   :  { %443 = vmatpush.msra.mxu0 %v2081_v19 }
  0x29   :  { %444 = vmatpush.msra.mxu0 %v2088_v21 }
  0x2b   :  { %445 = vmatpush.msra.mxu0 %v2093_v22 }
  0x87   :  { %v99_v26 = vpop.f32.mrf.mxu0 }
  0x88   :  { %v100_v27 = vadd.f32 %v99_v26, %v68_v23 }
  0x8a   :  { %v111_v29 = vmax.f32 %v100_v27, 0.0 }
  0x8c   :  { %1800 = vmatmul.msk.f32.vlgmr.msra.gmra.mxu1 %vm117_vm1, %v111_v29  ;;  %1804 = vmatmul.msk.f32.vlgmr.msra.gmra.mxu2 %vm117_vm1, %v111_v29 }
  0x8d   :  { %519 = vmatpush.msra.mxu2 %v2057_v14  ;;  %458 = vmatpush.msra.mxu1 %v2098_v24 }
  0x8f   :  { %v102_v33 = vpop.f32.mrf.mxu0  ;;  %520 = vmatpush.msra.mxu2 %v2062_v15  ;;  %459 = vmatpush.msra.mxu1 %v2103_v25 }
  0x90   :  { %v103_v34 = vadd.f32 %v102_v33, %v68_v23 }
  0x91   :  { %521 = vmatpush.msra.mxu2 %v2066_v16  ;;  %460 = vmatpush.msra.mxu1 %v2107_v28 }
  0x92   :  { %v112_v36 = vmax.f32 %v103_v34, 0.0 }
  0x93   :  { %522 = vmatpush.msra.mxu2 %v2071_v17  ;;  %461 = vmatpush.msra.mxu1 %v2111_v30 }
  0x94   :  { %1801 = vmatmul.msk.f32.gmra.mxu1 %vm117_vm1, %v112_v36  ;;  %1805 = vmatmul.msk.f32.gmra.mxu2 %vm117_vm1, %v112_v36 }
  0x95   :  { %523 = vmatpush.msra.mxu2 %v2075_v18  ;;  %462 = vmatpush.msra.mxu1 %v2117_v31 }
  0x97   :  { %v105_v38 = vpop.f32.mrf.mxu0  ;;  %524 = vmatpush.msra.mxu2 %v2081_v19  ;;  %463 = vmatpush.msra.mxu1 %v2121_v32 }
  0x98   :  { %v106_v39 = vadd.f32 %v105_v38, %v68_v23 }
  0x99   :  { %525 = vmatpush.msra.mxu2 %v2088_v21  ;;  %464 = vmatpush.msra.mxu1 %v2126_v35 }
  0x9a   :  { %v113_v40 = vmax.f32 %v106_v39, 0.0 }
  0x9b   :  { %526 = vmatpush.msra.mxu2 %v2093_v22  ;;  %465 = vmatpush.msra.mxu1 %v2131_v37 }
  0x9c   :  { %1802 = vmatmul.msk.f32.gmra.mxu1 %vm117_vm1, %v113_v40  ;;  %1806 = vmatmul.msk.f32.vlgmr.msra.gmra.mxu3 %vm117_vm1, %v113_v40 }
  0x9d   :  { %231 = vmatpush.msra.mxu3 %v2098_v24 }
  0x9f   :  { %v108_v41 = vpop.f32.mrf.mxu0  ;;  %232 = vmatpush.msra.mxu3 %v2103_v25 }
  0xa0   :  { %v109_v42 = vadd.f32 %v108_v41, %v68_v23 }
  0xa1   :  { %233 = vmatpush.msra.mxu3 %v2107_v28 }
  0xa2   :  { %v114_v43 = vmax.f32 %v109_v42, 0.0 }
  0xa3   :  { %234 = vmatpush.msra.mxu3 %v2111_v30 }
  0xa4   :  { %1803 = vmatmul.msk.f32.gmra.mxu1 %vm117_vm1, %v114_v43  ;;  %1807 = vmatmul.msk.f32.gmra.mxu3 %vm117_vm1, %v114_v43 }
  0xa5   :  { %235 = vmatpush.msra.mxu3 %v2117_v31 }
  0xa7   :  { %236 = vmatpush.msra.mxu3 %v2121_v32 }
  0xa9   :  { %237 = vmatpush.msra.mxu3 %v2126_v35 }
  0xab   :  { %238 = vmatpush.msra.mxu3 %v2131_v37 }
  0xac   :  { %219 = vmatmul.f32.vlgmr.msrb.gmra.mxu3 %v2019_v44 }
  0xad   :  { %386 = vmatpush.msrb.mxu3 %v2098_v24 }
  0xaf   :  { %387 = vmatpush.msrb.mxu3 %v2103_v25 }
  0xb1   :  { %388 = vmatpush.msrb.mxu3 %v2107_v28 }
  0xb3   :  { %389 = vmatpush.msrb.mxu3 %v2111_v30 }
  0xb4   :  { %239 = vmatmul.f32.vlgmr.msra.gmra.mxu3 %v2019_v44 }
  0xb5   :  { %390 = vmatpush.msrb.mxu3 %v2117_v31 }
  0xb7   :  { %391 = vmatpush.msrb.mxu3 %v2121_v32 }
  0xb9   :  { %392 = vmatpush.msrb.mxu3 %v2126_v35 }
  0xbb   :  { %393 = vmatpush.msrb.mxu3 %v2131_v37 }
  0xbd   :  { %539 = vmatpush.msra.mxu3 %v2098_v24 }
  0xbf   :  { %540 = vmatpush.msra.mxu3 %v2103_v25 }
  0xc1   :  { %541 = vmatpush.msra.mxu3 %v2107_v28 }
  0xc3   :  { %542 = vmatpush.msra.mxu3 %v2111_v30 }
  0xc5   :  { %543 = vmatpush.msra.mxu3 %v2117_v31 }
  0xc7   :  { %544 = vmatpush.msra.mxu3 %v2121_v32 }
  0xc9   :  { %545 = vmatpush.msra.mxu3 %v2126_v35 }
  0xcb   :  { %546 = vmatpush.msra.mxu3 %v2131_v37 }
 0x109   :  { %v147_v45 = vpop.f32.mrf.mxu1 }
 0x10a   :  { %v148_v59 = vadd.f32 %v147_v45, %v2181_v46 }
 0x10f   :  { %v176_v63 = vpop.f32.mrf.mxu2 }
 0x110   :  { %v177_v1 = vadd.f32 %v176_v63, %v2189_v52 }
 0x111   :  { %v150_v47 = vpop.f32.mrf.mxu1 }
 0x112   :  { %v2184_v48 = vadd.f32 %v150_v47, %v2181_v46 }
 0x119   :  { %v153_v49 = vpop.f32.mrf.mxu1 }
 0x11a   :  { %v2187_v50 = vadd.f32 %v153_v49, %v2181_v46 }
 0x11f   :  { %v182_v53 = vpop.f32.mrf.mxu3 }
 0x120   :  { %v2192_v54 = vadd.f32 %v182_v53, %v2189_v52 }
 0x121   :  { %v2236_v39 = vpop.f32.mrf.mxu1 }
 0x127   :  { %v185_v55 = vpop.f32.mrf.mxu3 }
 0x128   :  { %v2195_v56 = vadd.f32 %v185_v55, %v2189_v52 }
 0x12f   :  { %v220_v60 = vpop.f32.mrf.mxu3 }
 0x130   :  { %v243_v62 = vadd.f32 %v220_v60, %v148_v59 }
 0x132   :  { %v245_v0 = vmul.f32 0.5, %v243_v62 }
 0x134   :  { %1842 = vtanh.f32 %v245_v0 }
 0x137   :  { %v240_v4 = vpop.f32.mrf.mxu3 }
 0x138   :  { %v244_v5 = vadd.f32 %v240_v4, %v177_v1 }
 0x13a   :  { %v246_v6 = vmul.f32 %v244_v5, %v2207_v3  ;;  %v1843_v7 = vpop.eup %1842 }
 0x13b   :  { %v249_v9 = vmul.f32 0.5, %v1843_v7 }
 0x13c   :  { %1844 = vtanh.f32 %v246_v6 }
 0x13d   :  { %v251_v12 = vadd.f32 0.5, %v249_v9  ;;  %v179_v9 = vpop.f32.mrf.mxu2 }
 0x13f   :  { %v259_v26 = vmul.f32 0.0, %v251_v12 }
 0x142   :  { %v1845_v8 = vpop.eup %1844 }
 0x143   :  { %v250_v10 = vmul.f32 0.5, %v1845_v8 }
 0x145   :  { %v252_v11 = vadd.f32 0.5, %v250_v10  ;;  %v180_v10 = vadd.f32 %v179_v9, %v2189_v52 }
 0x147   :  { %v258_v13 = vsel %vm194_vm2, %v1845_v8, %v252_v11 }
 0x148   :  { %v260_v23 = vmul.f32 %v258_v13, %v251_v12 }
 0x14a   :  { %262 = vrot.lane.b32.xlu0 %v260_v23, %s2021_s0 }
 0x1bc   :  { %v263_v27 = vpop.permute.xlu0 %262 }
 0x1bd   :  { %v265_v29 = vadd.f32 %v263_v27, %v259_v26 }
 0x1bf   :  { %1846 = vtanh.f32 %v265_v29  ;;  %v335_v60 = vrot.slane %v265_v29, 4 }
 0x1c5   :  { %v1847_v33 = vpop.eup %1846 }
 0x1c6   :  { %v267_v34 = vmul.f32 %v1847_v33, %v258_v13 }
 0x1c8   :  { %269 = vrot.lane.b32.xlu0 %v267_v34, %s2021_s0 }
 0x23a   :  { %v270_v36 = vpop.permute.xlu0 %269 }
 0x23b   :  { %273 = vst.msk [vmem:[#allocation2] sm:$0xf] %vm272_vm3, %v270_v36  ;;  %1808 = vmatmul.msk.f32.vlgmr.msrb.gmra.mxu0 %vm199_vm4, %v270_v36  ;;  %1809 = vmatmul.msk.f32.vlgmr.msrb.gmra.mxu1 %vm199_vm4, %v270_v36 }
 0x23c   :  { %591 = vmatpush.msrb.mxu0 %v2057_v14  ;;  %611 = vmatpush.msrb.mxu1 %v2098_v24 }
 0x23e   :  { %592 = vmatpush.msrb.mxu0 %v2062_v15  ;;  %612 = vmatpush.msrb.mxu1 %v2103_v25 }
 0x240   :  { %593 = vmatpush.msrb.mxu0 %v2066_v16  ;;  %613 = vmatpush.msrb.mxu1 %v2107_v28 }
 0x242   :  { %v2223_v38 = vld [vmem:[#allocation2] sm:$0xf]  ;;  %594 = vmatpush.msrb.mxu0 %v2071_v17  ;;  %614 = vmatpush.msrb.mxu1 %v2111_v30 }
 0x243   :  { %829 = vst [vmem:[#allocation1] ss:$2 sm:$0xff] %v2223_v38 }
 0x244   :  { %595 = vmatpush.msrb.mxu0 %v2075_v18  ;;  %615 = vmatpush.msrb.mxu1 %v2117_v31 }
 0x246   :  { %596 = vmatpush.msrb.mxu0 %v2081_v19  ;;  %616 = vmatpush.msrb.mxu1 %v2121_v32 }
 0x248   :  { %597 = vmatpush.msrb.mxu0 %v2088_v21  ;;  %617 = vmatpush.msrb.mxu1 %v2126_v35 }
 0x24a   :  { %598 = vmatpush.msrb.mxu0 %v2093_v22  ;;  %618 = vmatpush.msrb.mxu1 %v2131_v37 }
 0x2b8   :  { %v293_v40 = vpop.f32.mrf.mxu0  ;;  %v313_v41 = vpop.f32.mrf.mxu1 }
 0x2b9   :  { %v318_v42 = vrot.slane %v293_v40, 4  ;;  %v319_v43 = vrot.slane %v313_v41, 4 }
 0x2bb   :  { %v322_v44 = vadd.f32 %v318_v42, %v148_v59  ;;  %v323_v45 = vadd.f32 %v319_v43, %v177_v1 }
 0x2bd   :  { %v324_v47 = vmul.f32 0.5, %v322_v44  ;;  %v325_v49 = vmul.f32 %v323_v45, %v2207_v3 }
 0x2bf   :  { %1848 = vtanh.f32 %v324_v47 }
 0x2c0   :  { %1850 = vtanh.f32 %v325_v49 }
 0x2c5   :  { %v1849_v51 = vpop.eup %1848 }
 0x2c6   :  { %v1851_v53 = vpop.eup %1850  ;;  %v328_v55 = vmul.f32 0.5, %v1849_v51 }
 0x2c7   :  { %v329_v57 = vmul.f32 0.5, %v1851_v53 }
 0x2c8   :  { %v330_v62 = vadd.f32 0.5, %v328_v55 }
 0x2c9   :  { %v331_v63 = vadd.f32 0.5, %v329_v57 }
 0x2ca   :  { %v337_v0 = vmul.f32 %v335_v60, %v330_v62 }
 0x2cb   :  { %v333_v2 = vsel %vm194_vm2, %v1851_v53, %v331_v63 }
 0x2cc   :  { %v338_v4 = vmul.f32 %v333_v2, %v330_v62 }
 0x2ce   :  { %340 = vrot.lane.b32.xlu1 %v338_v4, %s2021_s0 }
 0x340   :  { %v341_v59 = vpop.permute.xlu1 %340 }
 0x341   :  { %v343_v1 = vadd.f32 %v341_v59, %v337_v0 }
 0x343   :  { %1852 = vtanh.f32 %v343_v1  ;;  %v411_v40 = vrot.slane %v343_v1, 4 }
 0x349   :  { %v1853_v5 = vpop.eup %1852 }
 0x34a   :  { %v2242_v6 = vmul.f32 %v1853_v5, %v333_v2 }
 0x34c   :  { %v353_v7 = vrot.slane %v2242_v6, 4 }
 0x34e   :  { %354 = vrot.lane.b32.xlu1 %v353_v7, %s2021_s0 }
 0x3c0   :  { %v355_v8 = vpop.permute.xlu1 %354 }
 0x3c1   :  { %1810 = vmatmul.msk.f32.vlgmr.msrb.gmra.mxu2 %vm199_vm4, %v355_v8  ;;  %1811 = vmatmul.msk.f32.vlgmr.msrb.gmra.mxu3 %vm199_vm4, %v355_v8 }
 0x3c2   :  { %672 = vmatpush.msrb.mxu2 %v2057_v14  ;;  %692 = vmatpush.msrb.mxu3 %v2098_v24 }
 0x3c4   :  { %673 = vmatpush.msrb.mxu2 %v2062_v15  ;;  %693 = vmatpush.msrb.mxu3 %v2103_v25 }
 0x3c6   :  { %674 = vmatpush.msrb.mxu2 %v2066_v16  ;;  %694 = vmatpush.msrb.mxu3 %v2107_v28 }
 0x3c8   :  { %675 = vmatpush.msrb.mxu2 %v2071_v17  ;;  %695 = vmatpush.msrb.mxu3 %v2111_v30 }
 0x3ca   :  { %676 = vmatpush.msrb.mxu2 %v2075_v18  ;;  %696 = vmatpush.msrb.mxu3 %v2117_v31 }
 0x3cc   :  { %677 = vmatpush.msrb.mxu2 %v2081_v19  ;;  %697 = vmatpush.msrb.mxu3 %v2121_v32 }
 0x3ce   :  { %678 = vmatpush.msrb.mxu2 %v2088_v21  ;;  %698 = vmatpush.msrb.mxu3 %v2126_v35 }
 0x3d0   :  { %679 = vmatpush.msrb.mxu2 %v2093_v22  ;;  %699 = vmatpush.msrb.mxu3 %v2131_v37 }
 0x444   :  { %v375_v11 = vpop.f32.mrf.mxu2  ;;  %v395_v12 = vpop.f32.mrf.mxu3 }
 0x445   :  { %v398_v13 = vadd.f32 %v375_v11, %v2184_v48  ;;  %v399_v23 = vadd.f32 %v395_v12, %v180_v10 }
 0x447   :  { %v400_v26 = vmul.f32 0.5, %v398_v13  ;;  %v401_v27 = vmul.f32 %v399_v23, %v2207_v3 }
 0x449   :  { %1854 = vtanh.f32 %v400_v26 }
 0x44a   :  { %1856 = vtanh.f32 %v401_v27 }
 0x44f   :  { %v1855_v29 = vpop.eup %1854 }
 0x450   :  { %v1857_v33 = vpop.eup %1856  ;;  %v404_v34 = vmul.f32 0.5, %v1855_v29 }
 0x451   :  { %v405_v36 = vmul.f32 0.5, %v1857_v33 }
 0x452   :  { %v406_v41 = vadd.f32 0.5, %v404_v34 }
 0x453   :  { %v407_v42 = vadd.f32 0.5, %v405_v36 }
 0x454   :  { %v413_v43 = vmul.f32 %v411_v40, %v406_v41 }
 0x455   :  { %v409_v52 = vsel %vm194_vm2, %v1857_v33, %v407_v42 }
 0x456   :  { %v414_v44 = vmul.f32 %v409_v52, %v406_v41 }
 0x458   :  { %416 = vrot.lane.b32.xlu2 %v414_v44, %s2021_s0 }
 0x4b2   :  { %v417_v45 = vpop.permute.xlu2 %416 }
 0x4b3   :  { %v419_v47 = vadd.f32 %v417_v45, %v413_v43 }
 0x4b5   :  { %1858 = vtanh.f32 %v419_v47 }
 0x4bb   :  { %v1859_v49 = vpop.eup %1858 }
 0x4bc   :  { %v421_v51 = vmul.f32 %v1859_v49, %v409_v52 }
 0x4be   :  { %423 = vrot.lane.b32.xlu2 %v421_v51, %s2021_s0 }
 0x518   :  { %v424_v53 = vpop.permute.xlu2 %423 }
 0x519   :  { %427 = vst.msk [vmem:[#allocation2 + $0x8] sm:$0xf] %vm272_vm3, %v424_v53  ;;  %1812 = vmatmul.msk.f32.vlgmr.msra.gmra.mxu0 %vm199_vm4, %v424_v53  ;;  %1813 = vmatmul.msk.f32.vlgmr.msra.gmra.mxu1 %vm199_vm4, %v424_v53 }
 0x51a   :  { %744 = vmatpush.msra.mxu0 %v2057_v14  ;;  %764 = vmatpush.msra.mxu1 %v2098_v24 }
 0x51c   :  { %745 = vmatpush.msra.mxu0 %v2062_v15  ;;  %765 = vmatpush.msra.mxu1 %v2103_v25 }
 0x51e   :  { %746 = vmatpush.msra.mxu0 %v2066_v16  ;;  %766 = vmatpush.msra.mxu1 %v2107_v28 }
 0x520   :  { %v2280_v55 = vld [vmem:[#allocation2 + $0x8] sm:$0xf]  ;;  %747 = vmatpush.msra.mxu0 %v2071_v17  ;;  %767 = vmatpush.msra.mxu1 %v2111_v30 }
 0x521   :  { %833 = vst [vmem:[#allocation1 + $0x10] ss:$2 sm:$0xff] %v2280_v55 }
 0x522   :  { %748 = vmatpush.msra.mxu0 %v2075_v18  ;;  %768 = vmatpush.msra.mxu1 %v2117_v31 }
 0x524   :  { %749 = vmatpush.msra.mxu0 %v2081_v19  ;;  %769 = vmatpush.msra.mxu1 %v2121_v32  ;;  %v489_v32 = vrot.slane %v419_v47, 4 }
 0x526   :  { %750 = vmatpush.msra.mxu0 %v2088_v21  ;;  %770 = vmatpush.msra.mxu1 %v2126_v35 }
 0x528   :  { %751 = vmatpush.msra.mxu0 %v2093_v22  ;;  %771 = vmatpush.msra.mxu1 %v2131_v37 }
 0x596   :  { %v447_v14 = vpop.f32.mrf.mxu0  ;;  %v467_v15 = vpop.f32.mrf.mxu1 }
 0x597   :  { %v472_v16 = vrot.slane %v447_v14, 4  ;;  %v473_v17 = vrot.slane %v467_v15, 4 }
 0x599   :  { %v476_v18 = vadd.f32 %v472_v16, %v2184_v48  ;;  %v477_v24 = vadd.f32 %v473_v17, %v180_v10 }
 0x59b   :  { %v478_v25 = vmul.f32 0.5, %v476_v18  ;;  %v479_v19 = vmul.f32 %v477_v24, %v2207_v3 }
 0x59d   :  { %1860 = vtanh.f32 %v478_v25 }
 0x59e   :  { %1862 = vtanh.f32 %v479_v19 }
 0x5a3   :  { %v1861_v28 = vpop.eup %1860 }
 0x5a4   :  { %v1863_v21 = vpop.eup %1862  ;;  %v482_v30 = vmul.f32 0.5, %v1861_v28 }
 0x5a5   :  { %v483_v31 = vmul.f32 0.5, %v1863_v21 }
 0x5a6   :  { %v484_v22 = vadd.f32 0.5, %v482_v30 }
 0x5a7   :  { %v485_v35 = vadd.f32 0.5, %v483_v31 }
 0x5a8   :  { %v491_v37 = vmul.f32 %v489_v32, %v484_v22 }
 0x5a9   :  { %v487_v57 = vsel %vm194_vm2, %v1863_v21, %v485_v35 }
 0x5aa   :  { %v492_v60 = vmul.f32 %v487_v57, %v484_v22 }
 0x5ac   :  { %494 = vrot.lane.b32.xlu0 %v492_v60, %s2021_s0 }
 0x61e   :  { %v495_v48 = vpop.permute.xlu0 %494 }
 0x61f   :  { %v497_v62 = vadd.f32 %v495_v48, %v491_v37 }
 0x621   :  { %1864 = vtanh.f32 %v497_v62  ;;  %v564_v23 = vrot.slane %v497_v62, 4 }
 0x627   :  { %v1865_v63 = vpop.eup %1864 }
 0x628   :  { %v2298_v0 = vmul.f32 %v1865_v63, %v487_v57  ;;  %v2331_v57 = vadd.f32 %v2236_v39, %v2181_v46 }
 0x62a   :  { %v506_v2 = vrot.slane %v2298_v0, 4 }
 0x62c   :  { %507 = vrot.lane.b32.xlu1 %v506_v2, %s2021_s0 }
 0x69e   :  { %v508_v4 = vpop.permute.xlu1 %507 }
 0x69f   :  { %1814 = vmatmul.msk.f32.vlgmr.msra.gmra.mxu2 %vm199_vm4, %v508_v4  ;;  %1815 = vmatmul.msk.f32.vlgmr.msra.gmra.mxu3 %vm199_vm4, %v508_v4 }
 0x722   :  { %v528_v59 = vpop.f32.mrf.mxu2  ;;  %v548_v1 = vpop.f32.mrf.mxu3 }
 0x723   :  { %v551_v5 = vadd.f32 %v528_v59, %v2187_v50  ;;  %v552_v7 = vadd.f32 %v548_v1, %v2192_v54 }
 0x725   :  { %v553_v8 = vmul.f32 0.5, %v551_v5  ;;  %v554_v9 = vmul.f32 %v552_v7, %v2207_v3 }
 0x727   :  { %1866 = vtanh.f32 %v553_v8 }
 0x728   :  { %1868 = vtanh.f32 %v554_v9 }
 0x72d   :  { %v1867_v10 = vpop.eup %1866 }
 0x72e   :  { %v1869_v11 = vpop.eup %1868  ;;  %v557_v12 = vmul.f32 0.5, %v1867_v10 }
 0x72f   :  { %v558_v13 = vmul.f32 0.5, %v1869_v11 }
 0x730   :  { %v559_v26 = vadd.f32 0.5, %v557_v12  ;;  %v61_v12 = vld [vmem:[#allocation3 + $0x150] sm:$0xff] }
 0x731   :  { %v560_v27 = vadd.f32 0.5, %v558_v13  ;;  %864 = vmatpush.msra.mxu2 %v61_v12  ;;  %v60_v13 = vld [vmem:[#allocation3 + $0x140] sm:$0xff] }
 0x732   :  { %v566_v29 = vmul.f32 %v564_v23, %v559_v26  ;;  %v59_v23 = vld [vmem:[#allocation3 + $0x130] sm:$0xff] }
 0x733   :  { %v562_v33 = vsel %vm194_vm2, %v1869_v11, %v560_v27  ;;  %865 = vmatpush.msra.mxu2 %v60_v13  ;;  %v57_v27 = vld [vmem:[#allocation3 + $0x110] sm:$0xff] }
 0x734   :  { %v567_v34 = vmul.f32 %v562_v33, %v559_v26  ;;  %v58_v26 = vld [vmem:[#allocation3 + $0x120] sm:$0xff] }
 0x735   :  { %866 = vmatpush.msra.mxu2 %v59_v23 }
 0x736   :  { %569 = vrot.lane.b32.xlu2 %v567_v34, %s2021_s0  ;;  %v54_v34 = vld [vmem:[#allocation3 + $0xe0] sm:$0xff] }
 0x737   :  { %867 = vmatpush.msra.mxu2 %v58_v26 }
 0x739   :  { %868 = vmatpush.msra.mxu2 %v57_v27 }
 0x790   :  { %v570_v36 = vpop.permute.xlu2 %569 }
 0x791   :  { %v572_v40 = vadd.f32 %v570_v36, %v566_v29  ;;  %v56_v29 = vld [vmem:[#allocation3 + $0x100] sm:$0xff] }
 0x792   :  { %869 = vmatpush.msra.mxu2 %v56_v29 }
 0x793   :  { %1870 = vtanh.f32 %v572_v40  ;;  %v642_v25 = vrot.slane %v572_v40, 4 }
 0x799   :  { %v1871_v41 = vpop.eup %1870 }
 0x79a   :  { %v574_v42 = vmul.f32 %v1871_v41, %v562_v33  ;;  %v55_v33 = vld [vmem:[#allocation3 + $0xf0] sm:$0xff] }
 0x79b   :  { %870 = vmatpush.msra.mxu2 %v55_v33 }
 0x79c   :  { %576 = vrot.lane.b32.xlu0 %v574_v42, %s2021_s0 }
 0x79d   :  { %871 = vmatpush.msra.mxu2 %v54_v34 }
 0x80e   :  { %v577_v43 = vpop.permute.xlu0 %576 }
 0x80f   :  { %580 = vst.msk [vmem:[#allocation2 + $0x10] sm:$0xf] %vm272_vm3, %v577_v43  ;;  %1816 = vmatmul.msk.f32.vlgmr.msrb.gmra.mxu0 %vm199_vm4, %v577_v43  ;;  %1817 = vmatmul.msk.f32.vlgmr.msrb.gmra.mxu1 %vm199_vm4, %v577_v43 }
 0x816   :  { %v2314_v52 = vld [vmem:[#allocation2 + $0x10] sm:$0xf] }
 0x817   :  { %837 = vst [vmem:[#allocation1 + $0x20] ss:$2 sm:$0xff] %v2314_v52 }
 0x88c   :  { %v600_v44 = vpop.f32.mrf.mxu0  ;;  %v620_v45 = vpop.f32.mrf.mxu1 }
 0x88d   :  { %v625_v47 = vrot.slane %v600_v44, 4  ;;  %v626_v49 = vrot.slane %v620_v45, 4 }
 0x88f   :  { %v629_v51 = vadd.f32 %v625_v47, %v2187_v50  ;;  %v630_v53 = vadd.f32 %v626_v49, %v2192_v54 }
 0x891   :  { %v631_v14 = vmul.f32 0.5, %v629_v51  ;;  %v632_v15 = vmul.f32 %v630_v53, %v2207_v3  ;;  %v2361_v53 = vperm.slane %v2086_v20, 2 }
 0x893   :  { %1872 = vtanh.f32 %v631_v14 }
 0x894   :  { %1874 = vtanh.f32 %v632_v15 }
 0x899   :  { %v1873_v16 = vpop.eup %1872 }
 0x89a   :  { %v1875_v17 = vpop.eup %1874  ;;  %v635_v18 = vmul.f32 0.5, %v1873_v16  ;;  %v2365_v16 = vperm.slane %v2086_v20, 3 }
 0x89b   :  { %v636_v24 = vmul.f32 0.5, %v1875_v17 }
 0x89c   :  { %v637_v19 = vadd.f32 0.5, %v635_v18 }
 0x89d   :  { %v638_v28 = vadd.f32 0.5, %v636_v24 }
 0x89e   :  { %v644_v21 = vmul.f32 %v642_v25, %v637_v19 }
 0x89f   :  { %v640_v30 = vsel %vm194_vm2, %v1875_v17, %v638_v28 }
 0x8a0   :  { %v645_v31 = vmul.f32 %v640_v30, %v637_v19 }
 0x8a2   :  { %647 = vrot.lane.b32.xlu1 %v645_v31, %s2021_s0 }
 0x914   :  { %v648_v50 = vpop.permute.xlu1 %647 }
 0x915   :  { %v650_v54 = vadd.f32 %v648_v50, %v644_v21 }
 0x917   :  { %1876 = vtanh.f32 %v650_v54  ;;  %v717_v8 = vrot.slane %v650_v54, 4 }
 0x91d   :  { %v1877_v32 = vpop.eup %1876 }
 0x91e   :  { %v2323_v22 = vmul.f32 %v1877_v32, %v640_v30 }
 0x920   :  { %v659_v35 = vrot.slane %v2323_v22, 4 }
 0x922   :  { %660 = vrot.lane.b32.xlu2 %v659_v35, %s2021_s0 }
 0x97c   :  { %v661_v37 = vpop.permute.xlu2 %660 }
 0x97d   :  { %1818 = vmatmul.msk.f32.vlgmr.msrb.gmra.mxu2 %vm199_vm4, %v661_v37  ;;  %1819 = vmatmul.msk.f32.vlgmr.msrb.gmra.mxu3 %vm199_vm4, %v661_v37 }
 0xa00   :  { %v681_v60 = vpop.f32.mrf.mxu2  ;;  %v701_v48 = vpop.f32.mrf.mxu3 }
 0xa01   :  { %v704_v62 = vadd.f32 %v681_v60, %v2331_v57  ;;  %v705_v63 = vadd.f32 %v701_v48, %v2195_v56 }
 0xa03   :  { %v706_v2 = vmul.f32 0.5, %v704_v62  ;;  %v707_v4 = vmul.f32 %v705_v63, %v2207_v3 }
 0xa05   :  { %1878 = vtanh.f32 %v706_v2 }
 0xa06   :  { %1880 = vtanh.f32 %v707_v4 }
 0xa0b   :  { %v1879_v59 = vpop.eup %1878 }
 0xa0c   :  { %v1881_v1 = vpop.eup %1880  ;;  %v710_v5 = vmul.f32 0.5, %v1879_v59 }
 0xa0d   :  { %v711_v7 = vmul.f32 0.5, %v1881_v1 }
 0xa0e   :  { %v712_v9 = vadd.f32 0.5, %v710_v5 }
 0xa0f   :  { %v713_v10 = vadd.f32 0.5, %v711_v7 }
 0xa10   :  { %v719_v46 = vmul.f32 %v717_v8, %v712_v9 }
 0xa11   :  { %v715_v39 = vsel %vm194_vm2, %v1881_v1, %v713_v10 }
 0xa12   :  { %v720_v11 = vmul.f32 %v715_v39, %v712_v9 }
 0xa14   :  { %722 = vrot.lane.b32.xlu0 %v720_v11, %s2021_s0 }
 0xa1c   :  { %347 = vrot.lane.b32.xlu0 %v2242_v6, %s2021_s0 }
 0xa86   :  { %v723_v36 = vpop.permute.xlu0 %722 }
 0xa87   :  { %v725_v40 = vadd.f32 %v723_v36, %v719_v46 }
 0xa89   :  { %1882 = vtanh.f32 %v725_v40  ;;  %v795_v37 = vrot.slane %v725_v40, 4 }
 0xa8e   :  { %v348_v6 = vpop.permute.xlu0 %347 }
 0xa8f   :  { %v1883_v41 = vpop.eup %1882  ;;  %352 = vst.msk [vmem:[#allocation2] sm:$0xf0] %vm351_vm5, %v348_v6 }
 0xa90   :  { %v727_v42 = vmul.f32 %v1883_v41, %v715_v39 }
 0xa92   :  { %729 = vrot.lane.b32.xlu1 %v727_v42, %s2021_s0 }
 0xa96   :  { %v2343_v43 = vld [vmem:[#allocation2 + $0x4] sm:$0xf] }
 0xa97   :  { %831 = vst [vmem:[#allocation1 + $0x1] ss:$2 sm:$0xff] %v2343_v43 }
 0xa9a   :  { %501 = vrot.lane.b32.xlu1 %v2298_v0, %s2021_s0 }
 0xa9e   :  { %v844_v44 = vld.sshfl [vmem:[#allocation1] sm:$0xff pattern:$0x75316420] }
 0xa9f   :  { %1822 = vmatmul.msk.f32.vlgmr.msra.gmra.mxu2 %vm199_vm4, %v844_v44 }
 0xb04   :  { %v730_v45 = vpop.permute.xlu1 %729 }
 0xb05   :  { %733 = vst.msk [vmem:[#allocation2 + $0x18] sm:$0xf] %vm272_vm3, %v730_v45  ;;  %1820 = vmatmul.msk.f32.vlgmr.msra.gmra.mxu0 %vm199_vm4, %v730_v45  ;;  %1821 = vmatmul.msk.f32.vlgmr.msra.gmra.mxu1 %vm199_vm4, %v730_v45  ;;  %v2023_v45 = vmov 1985246804  }
 0xb0c   :  { %v2352_v47 = vld [vmem:[#allocation2 + $0x18] sm:$0xf]  ;;  %v502_v49 = vpop.permute.xlu1 %501 }
 0xb0d   :  { %841 = vst [vmem:[#allocation1 + $0x30] ss:$2 sm:$0xff] %v2352_v47 }
 0xb0e   :  { %505 = vst.msk [vmem:[#allocation2 + $0x8] sm:$0xf0] %vm351_vm5, %v502_v49  ;;  %v915_v49 = vunpack.c.l.s4 %v2023_v45 }
 0xb15   :  { %v2356_v51 = vld [vmem:[#allocation2 + $0xc] sm:$0xf] }
 0xb16   :  { %835 = vst [vmem:[#allocation1 + $0x11] ss:$2 sm:$0xff] %v2356_v51 }
 0xb1d   :  { %v845_v0 = vld.sshfl [vmem:[#allocation1 + $0x10] sm:$0xff pattern:$0x75316420] }
 0xb1e   :  { %1823 = vmatmul.msk.f32.gmra.mxu2 %vm199_vm4, %v845_v0  ;;  %v2405_v0 = vunpack.c.0.s8 %v915_v49 }
 0xb22   :  { %v873_v14 = vpop.f32.mrf.mxu2 }
 0xb23   :  { %v874_v15 = vadd.f32 %v873_v14, %v2361_v53 }
 0xb25   :  { %1884 = vtanh.f32 %v874_v15  ;;  %v2024_v15 = vmov 839922192  }
 0xb2b   :  { %v1885_v17 = vpop.eup %1884 }
 0xb2c   :  { %v890_v18 = vmul.f32 %v1885_v17, %v2365_v16  ;;  %v911_v17 = vunpack.c.l.s4 %v2024_v15 }
 0xb2e   :  { %954 = vrot.lane.b32.xlu1 %v890_v18, %s2022_s23  ;;  %v894_v61 = vsel %vm117_vm1, %v890_v18, 0.0 }
 0xb82   :  { %v753_v24 = vpop.f32.mrf.mxu0  ;;  %v773_v25 = vpop.f32.mrf.mxu1 }
 0xb83   :  { %v778_v19 = vrot.slane %v753_v24, 4  ;;  %v779_v28 = vrot.slane %v773_v25, 4 }
 0xb85   :  { %v782_v21 = vadd.f32 %v778_v19, %v2331_v57  ;;  %v783_v30 = vadd.f32 %v779_v28, %v2195_v56 }
 0xb87   :  { %v784_v31 = vmul.f32 0.5, %v782_v21  ;;  %v785_v50 = vmul.f32 %v783_v30, %v2207_v3 }
 0xb89   :  { %1886 = vtanh.f32 %v784_v31 }
 0xb8a   :  { %1888 = vtanh.f32 %v785_v50 }
 0xb8f   :  { %v1887_v20 = vpop.eup %1886 }
 0xb90   :  { %v1889_v54 = vpop.eup %1888  ;;  %v788_v32 = vmul.f32 0.5, %v1887_v20 }
 0xb91   :  { %v789_v35 = vmul.f32 0.5, %v1889_v54 }
 0xb92   :  { %v790_v60 = vadd.f32 0.5, %v788_v32 }
 0xb93   :  { %v791_v48 = vadd.f32 0.5, %v789_v35 }
 0xb94   :  { %v797_v62 = vmul.f32 %v795_v37, %v790_v60 }
 0xb95   :  { %v793_v63 = vsel %vm194_vm2, %v1889_v54, %v791_v48  ;;  %v1962_v48 = vld [vmem:[#allocation3 + $0x160] sm:$0xff] }
 0xb96   :  { %v798_v2 = vmul.f32 %v793_v63, %v790_v60 }
 0xb98   :  { %800 = vrot.lane.b32.xlu2 %v798_v2, %s2021_s0 }
 0xba0   :  { %654 = vrot.lane.b32.xlu2 %v2323_v22, %s2021_s0  ;;  %v955_v33 = vpop.permute.xlu1 %954 }
 0xba1   :  { %v876_v56 = vpop.f32.mrf.mxu2  ;;  %v966_v34 = vsel %vm117_vm1, %v955_v33, 0.0 }
 0xba2   :  { %v877_v3 = vadd.f32 %v876_v56, %v2361_v53 }
 0xba4   :  { %1890 = vtanh.f32 %v877_v3 }
 0xbaa   :  { %v1891_v57 = vpop.eup %1890 }
 0xbab   :  { %v2379_v4 = vmul.f32 %v1891_v57, %v2365_v16 }
 0xbad   :  { %956 = vrot.lane.b32.xlu2 %v2379_v4, %s2022_s23  ;;  %v897_v2 = vsel %vm117_vm1, %v2379_v4, 0.0 }
 0xbd6   :  { %895 = vadd.xlane.f32.xlu2 %v894_v61 }
 0xbf2   :  { %v801_v59 = vpop.permute.xlu2 %800 }
 0xbf3   :  { %v803_v1 = vadd.f32 %v801_v59, %v797_v62  ;;  %v2419_v62 = vperm.slane %v1962_v48, 4 }
 0xbf5   :  { %1892 = vtanh.f32 %v803_v1 }
 0xbfa   :  { %v655_v5 = vpop.permute.xlu2 %654 }
 0xbfb   :  { %v1893_v7 = vpop.eup %1892  ;;  %658 = vst.msk [vmem:[#allocation2 + $0x10] sm:$0xf0] %vm351_vm5, %v655_v5 }
 0xbfc   :  { %v805_v22 = vmul.f32 %v1893_v7, %v793_v63 }
 0xbfe   :  { %807 = vrot.lane.b32.xlu0 %v805_v22, %s2021_s0 }
 0xc02   :  { %v2386_v8 = vld [vmem:[#allocation2 + $0x14] sm:$0xf] }
 0xc03   :  { %839 = vst [vmem:[#allocation1 + $0x21] ss:$2 sm:$0xff] %v2386_v8 }
 0xc07   :  { %v957_v9 = vpop.permute.xlu2 %956 }
 0xc08   :  { %v969_v10 = vsel %vm117_vm1, %v957_v9, 0.0 }
 0xc09   :  { %970 = vadd.xlane.f32.xlu2 %v969_v10 }
 0xc0a   :  { %v846_v46 = vld.sshfl [vmem:[#allocation1 + $0x20] sm:$0xff pattern:$0x75316420] }
 0xc0b   :  { %1824 = vmatmul.msk.f32.gmra.mxu2 %vm199_vm4, %v846_v46 }
 0xc49   :  { %v896_v14 = vpop.xlane.xlu2 %895 }
 0xc4a   :  { %v917_v18 = vperm.slane %v896_v14, %v2405_v0 }
 0xc4c   :  { %v1030_v24 = vsel %vm1022_vm6, %v917_v18, -inf }
 0xc70   :  { %v808_v39 = vpop.permute.xlu0 %807 }
 0xc71   :  { %811 = vst.msk [vmem:[#allocation2 + $0x18] sm:$0xf0] %vm351_vm5, %v808_v39 }
 0xc78   :  { %v2392_v11 = vld [vmem:[#allocation2 + $0x1c] sm:$0xf] }
 0xc79   :  { %843 = vst [vmem:[#allocation1 + $0x31] ss:$2 sm:$0xff] %v2392_v11 }
 0xc7c   :  { %v971_v37 = vpop.xlane.xlu2 %970 }
 0xc80   :  { %v847_v12 = vld.sshfl [vmem:[#allocation1 + $0x30] sm:$0xff pattern:$0x75316420] }
 0xc81   :  { %1825 = vmatmul.msk.f32.gmra.mxu2 %vm199_vm4, %v847_v12 }
 0xc8e   :  { %v879_v13 = vpop.f32.mrf.mxu2 }
 0xc8f   :  { %v880_v23 = vadd.f32 %v879_v13, %v2361_v53 }
 0xc91   :  { %1894 = vtanh.f32 %v880_v23 }
 0xc97   :  { %v1895_v26 = vpop.eup %1894 }
 0xc98   :  { %v892_v27 = vmul.f32 %v1895_v26, %v2365_v16 }
 0xc9a   :  { %958 = vrot.lane.b32.xlu0 %v892_v27, %s2022_s23  ;;  %v900_v29 = vsel %vm117_vm1, %v892_v27, 0.0 }
 0xc9b   :  { %901 = vadd.xlane.f32.xlu2 %v900_v29 }
 0xcc4   :  { %967 = vadd.xlane.f32.xlu0 %v966_v34 }
 0xd04   :  { %v882_v36 = vpop.f32.mrf.mxu2 }
 0xd05   :  { %v883_v40 = vadd.f32 %v882_v36, %v2361_v53  ;;  %v2408_v53 = vunpack.c.0.s8 %v911_v17 }
 0xd07   :  { %1896 = vtanh.f32 %v883_v40  ;;  %v913_v25 = vperm.slane %v896_v14, %v2408_v53 }
 0xd09   :  { %v1023_v19 = vsel %vm1022_vm6, %v913_v25, -inf }
 0xd0a   :  { %v1024_v21 = vrot.slane %v1023_v19, 4 }
 0xd0c   :  { %v959_v41 = vpop.permute.xlu0 %958  ;;  %v1025_v31 = vmax.f32 %v1023_v19, %v1024_v21 }
 0xd0d   :  { %v1897_v6 = vpop.eup %1896  ;;  %v972_v42 = vsel %vm117_vm1, %v959_v41, 0.0 }
 0xd0e   :  { %v893_v44 = vmul.f32 %v1897_v6, %v2365_v16  ;;  %973 = vadd.xlane.f32.xlu0 %v972_v42  ;;  %v1031_v16 = vrot.slane %v1030_v24, 4  ;;  %v1026_v20 = vrot.slane %v1025_v31, 2  ;;  %v902_v57 = vpop.xlane.xlu2 %901 }
 0xd0f   :  { %v929_v59 = vperm.slane %v902_v57, %v2408_v53  ;;  %v933_v22 = vperm.slane %v902_v57, %v2405_v0 }
 0xd10   :  { %960 = vrot.lane.b32.xlu1 %v893_v44, %s2022_s23  ;;  %v1032_v28 = vmax.f32 %v1030_v24, %v1031_v16  ;;  %v1027_v32 = vmax.f32 %v1025_v31, %v1026_v20  ;;  %v903_v1 = vsel %vm117_vm1, %v893_v44, 0.0  ;;  %v2441_v24 = vperm.slane %v971_v37, %v2408_v53 }
 0xd11   :  { %v1051_v7 = vsel %vm1022_vm6, %v929_v59, -inf  ;;  %v1058_v10 = vsel %vm1022_vm6, %v933_v22, -inf }
 0xd12   :  { %v1033_v30 = vrot.slane %v1032_v28, 2  ;;  %v1028_v60 = vrot.slane %v1027_v32, 1  ;;  %v1052_v9 = vrot.slane %v1051_v7, 4  ;;  %v1059_v12 = vrot.slane %v1058_v10, 4 }
 0xd14   :  { %v1034_v50 = vmax.f32 %v1032_v28, %v1033_v30  ;;  %v1029_v56 = vmax.f32 %v1027_v32, %v1028_v60  ;;  %v1053_v39 = vmax.f32 %v1051_v7, %v1052_v9  ;;  %v1060_v29 = vmax.f32 %v1058_v10, %v1059_v12 }
 0xd16   :  { %v1035_v54 = vrot.slane %v1034_v50, 1  ;;  %v1079_v61 = vsub.f32 %v913_v25, %v1029_v56  ;;  %v1054_v26 = vrot.slane %v1053_v39, 2  ;;  %v1061_v40 = vrot.slane %v1060_v29, 2 }
 0xd17   :  { %v2444_v25 = vperm.slane %v971_v37, %v2405_v0 }
 0xd18   :  { %v1036_v35 = vmax.f32 %v1034_v50, %v1035_v54  ;;  %v1087_v5 = vmul.f32 1.442695, %v1079_v61  ;;  %v1055_v36 = vmax.f32 %v1053_v39, %v1054_v26  ;;  %v1062_v44 = vmax.f32 %v1060_v29, %v1061_v40 }
 0xd19   :  { %v1358_v50 = vsel %vm1022_vm6, %v2441_v24, -inf  ;;  %v1365_v20 = vsel %vm1022_vm6, %v2444_v25, -inf }
 0xd1a   :  { %v1080_v63 = vsub.f32 %v917_v18, %v1036_v35  ;;  %v1056_v42 = vrot.slane %v1055_v36, 1  ;;  %v1063_v15 = vrot.slane %v1062_v44, 1  ;;  %v1359_v35 = vrot.slane %v1358_v50, 4 }
 0xd1b   :  { %v1366_v37 = vrot.slane %v1365_v20, 4 }
 0xd1c   :  { %v1089_v3 = vmul.f32 1.442695, %v1080_v63  ;;  %v1057_v14 = vmax.f32 %v1055_v36, %v1056_v42  ;;  %v1064_v28 = vmax.f32 %v1062_v44, %v1063_v15  ;;  %v1360_v56 = vmax.f32 %v1358_v50, %v1359_v35 }
 0xd1e   :  { %1898 = vpow2.f32 %v1089_v3  ;;  %v1083_v16 = vsub.f32 %v929_v59, %v1057_v14  ;;  %v1084_v32 = vsub.f32 %v933_v22, %v1064_v28  ;;  %v1367_v3 = vmax.f32 %v1365_v20, %v1366_v37 }
 0xd1f   :  { %1900 = vpow2.f32 %v1087_v5  ;;  %v1361_v5 = vrot.slane %v1360_v56, 2 }
 0xd20   :  { %v1095_v54 = vmul.f32 1.442695, %v1083_v16  ;;  %v1097_v63 = vmul.f32 1.442695, %v1084_v32  ;;  %v1368_v7 = vrot.slane %v1367_v3, 2 }
 0xd21   :  { %v1362_v12 = vmax.f32 %v1360_v56, %v1361_v5 }
 0xd22   :  { %1602 = vrot.lane.b32.xlu0 %v2343_v43, %s2022_s23 }
 0xd23   :  { %v1363_v36 = vrot.slane %v1362_v12, 1 }
 0xd24   :  { %v2429_v4 = vpop.eup %1898 }
 0xd25   :  { %v1110_v46 = vsel %vm1022_vm6, %v2429_v4, 0.0  ;;  %v2434_v13 = vpop.eup %1900 }
 0xd26   :  { %v1111_v23 = vrot.slane %v1110_v46, 4  ;;  %v1103_v27 = vsel %vm1022_vm6, %v2434_v13, 0.0 }
 0xd27   :  { %v1104_v34 = vrot.slane %v1103_v27, 4 }
 0xd28   :  { %v1112_v33 = vadd.f32 %v1111_v23, %v1110_v46  ;;  %v1369_v23 = vmax.f32 %v1367_v3, %v1368_v7 }
 0xd29   :  { %v1105_v41 = vadd.f32 %v1104_v34, %v1103_v27 }
 0xd2a   :  { %1606 = vrot.lane.b32.xlu0 %v2356_v51, %s2022_s23  ;;  %v1113_v6 = vrot.slane %v1112_v33, 2  ;;  %v1370_v40 = vrot.slane %v1369_v23, 1 }
 0xd2b   :  { %v1106_v49 = vrot.slane %v1105_v41, 2 }
 0xd2c   :  { %v1114_v45 = vadd.f32 %v1113_v6, %v1112_v33  ;;  %v1371_v14 = vmax.f32 %v1369_v23, %v1370_v40 }
 0xd2d   :  { %v1107_v18 = vadd.f32 %v1106_v49, %v1105_v41  ;;  %v1364_v49 = vmax.f32 %v1362_v12, %v1363_v36 }
 0xd2e   :  { %v1115_v17 = vrot.slane %v1114_v45, 1  ;;  %v1403_v32 = vsub.f32 %v2444_v25, %v1371_v14 }
 0xd2f   :  { %v1108_v31 = vrot.slane %v1107_v18, 1 }
 0xd30   :  { %v2446_v21 = vadd.f32 %v1115_v17, %v1114_v45  ;;  %v1414_v3 = vmul.f32 1.442695, %v1403_v32 }
 0xd31   :  { %v2460_v48 = vadd.f32 %v1108_v31, %v1107_v18 }
 0xd32   :  { %1610 = vrot.lane.b32.xlu0 %v2386_v8, %s2022_s23  ;;  %1902 = vrcp.f32 %v2446_v21  ;;  %v1185_v15 = vand.u32 2147483648, %v2446_v21  ;;  %vm1179_vm8 = vweird.f32 %v2446_v21  ;;  %v1183_v28 = vand.u32 2147483647, %v2446_v21 }
 0xd33   :  { %1904 = vpow2.f32 %v1095_v54  ;;  %v1402_v54 = vsub.f32 %v2441_v24, %v1364_v49  ;;  %v1168_v35 = vand.u32 2147483647, %v2460_v48  ;;  %vm1164_vm12 = vweird.f32 %v2460_v48 }
 0xd34   :  { %1906 = vrcp.f32 %v2460_v48  ;;  %v1186_v37 = vor.u32 1.1754944e-38, %v1185_v15  ;;  %vm1184_vm11 = vcmp.eq.f32.partialorder %v1183_v28, 8.507059e+37 }
 0xd35   :  { %1908 = vpow2.f32 %v1097_v63  ;;  %v1412_v25 = vmul.f32 1.442695, %v1402_v54  ;;  %vm1169_vm14 = vcmp.eq.f32.partialorder %v1168_v35, 8.507059e+37 }
 0xd37   :  { %v968_v19 = vpop.xlane.xlu0 %967  ;;  %1910 = vpow2.f32 %v1412_v25 }
 0xd38   :  { %v2449_v30 = vperm.slane %v968_v19, %v2405_v0  ;;  %v1903_v57 = vpop.eup %1902  ;;  %v2480_v18 = vperm.slane %v968_v19, %v2408_v53  ;;  %1912 = vpow2.f32 %v1414_v3 }
 0xd39   :  { %v2465_v61 = vpop.eup %1904  ;;  %vm1180_vm7 = vweird.f32 %v1903_v57 }
 0xd3a   :  { %898 = vadd.xlane.f32.xlu1 %v897_v2  ;;  %1731 = vrot.lane.b32.xlu0 %v2419_v62, %s2022_s23  ;;  %v1351_v60 = vsel %vm1022_vm6, %v2449_v30, -inf  ;;  %v1131_v22 = vsel %vm1022_vm6, %v2465_v61, 0.0  ;;  %v2470_v9 = vpop.eup %1906  ;;  %vm1181_vm9 = vmor %vm1179_vm8, %vm1180_vm7  ;;  %v1344_v19 = vsel %vm1022_vm6, %v2480_v18, -inf }
 0xd3b   :  { %v1352_v2 = vrot.slane %v1351_v60, 4  ;;  %v2472_v46 = vpop.eup %1908  ;;  %v1132_v26 = vrot.slane %v1131_v22, 4  ;;  %v1160_v27 = vmul.f32 %v2470_v9, %v2460_v48  ;;  %vm1165_vm10 = vweird.f32 %v2470_v9 }
 0xd3c   :  { %v1138_v29 = vsel %vm1022_vm6, %v2472_v46, 0.0  ;;  %vm2495_vm13 = vmor %vm1164_vm12, %vm1165_vm10  ;;  %vm1706_vm10 = vcmask 1041409  }
 0xd3d   :  { %v1353_v59 = vmax.f32 %v1351_v60, %v1352_v2  ;;  %v1133_v6 = vadd.f32 %v1132_v26, %v1131_v22  ;;  %v1161_v41 = vsub.f32 1.0, %v1160_v27  ;;  %v1139_v42 = vrot.slane %v1138_v29, 4  ;;  %v2516_v15 = vpop.eup %1910 }
 0xd3e   :  { %v1170_v2 = vand.u32 2147483648, %v2460_v48 }
 0xd3f   :  { %v1354_v10 = vrot.slane %v1353_v59, 2  ;;  %v1134_v17 = vrot.slane %v1133_v6, 2  ;;  %v1162_v16 = vmul.f32 %v2470_v9, %v1161_v41  ;;  %v1140_v31 = vadd.f32 %v1139_v42, %v1138_v29 }
 0xd40   :  { %v1171_v23 = vor.u32 1.1754944e-38, %v1170_v2 }
 0xd41   :  { %v1355_v33 = vmax.f32 %v1353_v59, %v1354_v10  ;;  %v1135_v60 = vadd.f32 %v1134_v17, %v1133_v6  ;;  %v1163_v63 = vadd.f32 %v2470_v9, %v1162_v16 }
 0xd42   :  { %904 = vadd.xlane.f32.xlu1 %v903_v1  ;;  %v1175_v1 = vmul.f32 %v1903_v57, %v2446_v21  ;;  %v1141_v21 = vrot.slane %v1140_v31, 2 }
 0xd43   :  { %v1356_v44 = vrot.slane %v1355_v33, 1  ;;  %v1136_v7 = vrot.slane %v1135_v60, 1 }
 0xd44   :  { %v1176_v39 = vsub.f32 1.0, %v1175_v1  ;;  %v1142_v12 = vadd.f32 %v1141_v21, %v1140_v31  ;;  %v2521_v31 = vpop.eup %1912 }
 0xd45   :  { %v1357_v50 = vmax.f32 %v1355_v33, %v1356_v44  ;;  %v2511_v6 = vadd.f32 %v1136_v7, %v1135_v60 }
 0xd46   :  { %v1177_v34 = vmul.f32 %v1903_v57, %v1176_v39 }
 0xd47   :  { %v1401_v24 = vsub.f32 %v2449_v30, %v1357_v50  ;;  %v1167_v30 = vsel %vm2495_vm13, %v2470_v9, %v1163_v63  ;;  %vm1224_vm2 = vweird.f32 %v2511_v6 }
 0xd48   :  { %v1178_v45 = vadd.f32 %v1903_v57, %v1177_v34  ;;  %v1172_v40 = vsel %vm1169_vm14, %v1171_v23, %v1167_v30 }
 0xd49   :  { %v1410_v26 = vmul.f32 1.442695, %v1401_v24  ;;  %v1173_v14 = vmul.f32 %v2434_v13, %v1172_v40  ;;  %v1438_v13 = vsel %vm1022_vm6, %v2516_v15, 0.0 }
 0xd4a   :  { %v1182_v20 = vsel %vm1181_vm9, %v1903_v57, %v1178_v45  ;;  %v1345_v57 = vrot.slane %v1344_v19, 4  ;;  %v1439_v21 = vrot.slane %v1438_v13, 4 }
 0xd4b   :  { %v1187_v56 = vsel %vm1184_vm11, %v1186_v37, %v1182_v20  ;;  %1914 = vpow2.f32 %v1410_v26  ;;  %v1279_v32 = vmul.f32 %v1173_v14, %v2223_v38  ;;  %v1445_v37 = vsel %vm1022_vm6, %v2521_v31, 0.0 }
 0xd4c   :  { %v1188_v48 = vmul.f32 %v2429_v4, %v1187_v56  ;;  %v1346_v33 = vmax.f32 %v1344_v19, %v1345_v57  ;;  %v1143_v4 = vrot.slane %v1142_v12, 1  ;;  %1916 = vrcp.f32 %v2511_v6 }
 0xd4d   :  { %v1446_v3 = vrot.slane %v1445_v37, 4  ;;  %v1288_v57 = vsel %vm1287_vm15, %v1279_v32, 0.0  ;;  %v1440_v30 = vadd.f32 %v1439_v21, %v1438_v13  ;;  %v1228_v13 = vand.u32 2147483647, %v2511_v6 }
 0xd4e   :  { %v1280_v9 = vmul.f32 %v1188_v48, %v2343_v43  ;;  %v1347_v44 = vrot.slane %v1346_v33, 2  ;;  %v2519_v16 = vadd.f32 %v1143_v4, %v1142_v12  ;;  %v1289_v12 = vrot.slane %v1288_v57, 4 }
 0xd4f   :  { %v1447_v26 = vadd.f32 %v1446_v3, %v1445_v37  ;;  %vm1229_vm5 = vcmp.eq.f32.partialorder %v1228_v13, 8.507059e+37 }
 0xd50   :  { %v1295_v17 = vsel %vm1287_vm15, %v1280_v9, 0.0  ;;  %v1348_v50 = vmax.f32 %v1346_v33, %v1347_v44  ;;  %1918 = vrcp.f32 %v2519_v16  ;;  %v1290_v40 = vadd.f32 %v1289_v12, %v1288_v57 }
 0xd51   :  { %v2523_v54 = vpop.eup %1914  ;;  %v1296_v35 = vrot.slane %v1295_v17, 4  ;;  %v1448_v4 = vrot.slane %v1447_v26, 2  ;;  %vm1239_vm7 = vweird.f32 %v2519_v16 }
 0xd52   :  { %v2531_v63 = vpop.eup %1916  ;;  %v1349_v2 = vrot.slane %v1348_v50, 1  ;;  %v1431_v56 = vsel %vm1022_vm6, %v2523_v54, 0.0 }
 0xd53   :  { %v1297_v25 = vadd.f32 %v1296_v35, %v1295_v17  ;;  %v1432_v7 = vrot.slane %v1431_v56, 4  ;;  %v1291_v17 = vrot.slane %v1290_v40, 2  ;;  %vm1225_vm0 = vweird.f32 %v2531_v63 }
 0xd54   :  { %v1350_v48 = vmax.f32 %v1348_v50, %v1349_v2  ;;  %vm2557_vm3 = vmor %vm1224_vm2, %vm1225_vm0 }
 0xd55   :  { %v1298_v23 = vrot.slane %v1297_v25, 2  ;;  %v1433_v33 = vadd.f32 %v1432_v7, %v1431_v56 }
 0xd57   :  { %v1299_v9 = vadd.f32 %v1298_v23, %v1297_v25 }
 0xd5b   :  { %1604 = vrot.lane.b32.xlu1 %v2280_v55, %s2022_s23 }
 0xd63   :  { %1608 = vrot.lane.b32.xlu1 %v2314_v52, %s2022_s23 }
 0xd6b   :  { %1614 = vrot.lane.b32.xlu1 %v2392_v11, %s2022_s23 }
 0xd81   :  { %v974_v59 = vpop.xlane.xlu0 %973 }
 0xd82   :  { %v961_v1 = vpop.permute.xlu1 %960  ;;  %v2500_v22 = vperm.slane %v974_v59, %v2408_v53  ;;  %v1005_v10 = vperm.slane %v974_v59, %v2405_v0  ;;  %v1220_v59 = vmul.f32 %v2531_v63, %v2511_v6 }
 0xd83   :  { %v975_v39 = vsel %vm117_vm1, %v961_v1, 0.0 }
 0xd84   :  { %976 = vadd.xlane.f32.xlu2 %v975_v39  ;;  %v1372_v27 = vsel %vm1022_vm6, %v2500_v22, -inf  ;;  %v1379_v29 = vsel %vm1022_vm6, %v1005_v10, -inf  ;;  %v2538_v39 = vpop.eup %1918 }
 0xd85   :  { %v1373_v34 = vrot.slane %v1372_v27, 4  ;;  %v1380_v36 = vrot.slane %v1379_v29, 4  ;;  %vm1240_vm4 = vweird.f32 %v2538_v39 }
 0xd86   :  { %vm1241_vm8 = vmor %vm1239_vm7, %vm1240_vm4 }
 0xd87   :  { %v1374_v41 = vmax.f32 %v1372_v27, %v1373_v34  ;;  %v1381_v42 = vmax.f32 %v1379_v29, %v1380_v36  ;;  %v1221_v27 = vsub.f32 1.0, %v1220_v59  ;;  %v1235_v29 = vmul.f32 %v2538_v39, %v2519_v16 }
 0xd88   :  { %v1441_v34 = vrot.slane %v1440_v30, 2  ;;  %v1400_v36 = vsub.f32 %v2480_v18, %v1350_v48  ;;  %v1245_v59 = vand.u32 2147483648, %v2519_v16 }
 0xd89   :  { %v1375_v45 = vrot.slane %v1374_v41, 2  ;;  %v1382_v49 = vrot.slane %v1381_v42, 2 }
 0xd8a   :  { %v1408_v14 = vmul.f32 1.442695, %v1400_v36 }
 0xd8b   :  { %v1376_v28 = vmax.f32 %v1374_v41, %v1375_v45  ;;  %v1383_v43 = vmax.f32 %v1381_v42, %v1382_v49  ;;  %v1222_v41 = vmul.f32 %v2531_v63, %v1221_v27  ;;  %v1236_v45 = vsub.f32 1.0, %v1235_v29 }
 0xd8c   :  { %v1442_v49 = vadd.f32 %v1441_v34, %v1440_v30  ;;  %v1246_v29 = vor.u32 1.1754944e-38, %v1245_v59 }
 0xd8d   :  { %v1384_v20 = vrot.slane %v1383_v43, 1  ;;  %v1377_v60 = vrot.slane %v1376_v28, 1  ;;  %v1223_v18 = vadd.f32 %v2531_v63, %v1222_v41 }
 0xd8e   :  { %v1443_v35 = vrot.slane %v1442_v49, 1 }
 0xd8f   :  { %v1385_v19 = vmax.f32 %v1383_v43, %v1384_v20  ;;  %v1378_v1 = vmax.f32 %v1376_v28, %v1377_v60  ;;  %v1300_v28 = vrot.slane %v1299_v9, 1  ;;  %v1449_v43 = vadd.f32 %v1448_v4, %v1447_v26 }
 0xd90   :  { %v1230_v20 = vand.u32 2147483648, %v2511_v6  ;;  %v1227_v56 = vsel %vm2557_vm3, %v2531_v63, %v1223_v18  ;;  %v2570_v57 = vadd.f32 %v1443_v35, %v1442_v49  ;;  %v1243_v63 = vand.u32 2147483647, %v2519_v16 }
 0xd91   :  { %v1405_v24 = vsub.f32 %v1005_v10, %v1385_v19  ;;  %v1404_v10 = vsub.f32 %v2500_v22, %v1378_v1  ;;  %v1434_v22 = vrot.slane %v1433_v33, 2  ;;  %v1292_v19 = vadd.f32 %v1291_v17, %v1290_v40 }
 0xd92   :  { %v1301_v21 = vadd.f32 %v1300_v28, %v1299_v9  ;;  %v1450_v2 = vrot.slane %v1449_v43, 1  ;;  %vm1244_vm9 = vcmp.eq.f32.partialorder %v1243_v63, 8.507059e+37  ;;  %vm1515_vm11 = vweird.f32 %v2570_v57 }
 0xd93   :  { %v1418_v5 = vmul.f32 1.442695, %v1405_v24  ;;  %v1416_v42 = vmul.f32 1.442695, %v1404_v10  ;;  %v1435_v32 = vadd.f32 %v1434_v22, %v1433_v33  ;;  %v1231_v24 = vor.u32 1.1754944e-38, %v1230_v20 }
 0xd94   :  { %v1293_v30 = vrot.slane %v1292_v19, 1  ;;  %v2577_v48 = vadd.f32 %v1450_v2, %v1449_v43  ;;  %v1690_v27 = vmul.f32 %v2419_v62, %v1301_v21  ;;  %v1519_v2 = vand.u32 2147483647, %v2570_v57 }
 0xd95   :  { %1920 = vpow2.f32 %v1418_v5  ;;  %v1436_v6 = vrot.slane %v1435_v32, 1  ;;  %v1232_v1 = vsel %vm1229_vm5, %v1231_v24, %v1227_v56  ;;  %v1521_v56 = vand.u32 2147483648, %v2570_v57 }
 0xd96   :  { %1922 = vpow2.f32 %v1416_v42  ;;  %v1233_v10 = vmul.f32 %v2465_v61, %v1232_v1  ;;  %v1294_v34 = vadd.f32 %v1293_v30, %v1292_v19  ;;  %v1705_v9 = vrot.slane %v1690_v27, 7 }
 0xd97   :  { %1924 = vpow2.f32 %v1408_v14  ;;  %v2580_v23 = vadd.f32 %v1436_v6, %v1435_v32  ;;  %vm1530_vm5 = vweird.f32 %v2577_v48  ;;  %vm1520_vm7 = vcmp.eq.f32.partialorder %v1519_v2, 8.507059e+37 }
 0xd98   :  { %1926 = vrcp.f32 %v2570_v57  ;;  %v1283_v4 = vmul.f32 %v1233_v10, %v2314_v52  ;;  %v1689_v52 = vmul.f32 %v2419_v62, %v1294_v34 }
 0xd99   :  { %1928 = vrcp.f32 %v2577_v48  ;;  %vm1500_vm0 = vweird.f32 %v2580_v23 }
 0xd9a   :  { %1930 = vrcp.f32 %v2580_v23  ;;  %v1316_v20 = vsel %vm1287_vm15, %v1283_v4, 0.0 }
 0xd9b   :  { %v2547_v44 = vpop.eup %1920  ;;  %v1317_v24 = vrot.slane %v1316_v20, 4 }
 0xd9c   :  { %1600 = vrot.lane.b32.xlu2 %v2223_v38, %s2022_s23  ;;  %v1459_v50 = vsel %vm1022_vm6, %v2547_v44, 0.0  ;;  %v1237_v38 = vmul.f32 %v2538_v39, %v1236_v45  ;;  %v2568_v3 = vpop.eup %1922 }
 0xd9d   :  { %v1460_v60 = vrot.slane %v1459_v50, 4  ;;  %v2575_v7 = vpop.eup %1924  ;;  %v1452_v26 = vsel %vm1022_vm6, %v2568_v3, 0.0  ;;  %v1318_v4 = vadd.f32 %v1317_v24, %v1316_v20 }
 0xd9e   :  { %v1238_v25 = vadd.f32 %v2538_v39, %v1237_v38  ;;  %v1424_v16 = vsel %vm1022_vm6, %v2575_v7, 0.0  ;;  %v1453_v36 = vrot.slane %v1452_v26, 4  ;;  %v2604_v28 = vpop.eup %1926  ;;  %v2610_v38 = vsel %vm1706_vm10, %v1705_v9, %v1689_v52 }
 0xd9f   :  { %v1461_v5 = vadd.f32 %v1460_v60, %v1459_v50  ;;  %v1425_v61 = vrot.slane %v1424_v16, 4  ;;  %v2606_v50 = vpop.eup %1928  ;;  %v1511_v21 = vmul.f32 %v2604_v28, %v2570_v57  ;;  %vm1516_vm12 = vweird.f32 %v2604_v28 }
 0xda0   :  { %v1242_v12 = vsel %vm1241_vm8, %v2538_v39, %v1238_v25  ;;  %v1454_v49 = vadd.f32 %v1453_v36, %v1452_v26  ;;  %v2612_v32 = vpop.eup %1930  ;;  %v1526_v25 = vmul.f32 %v2606_v50, %v2577_v48  ;;  %vm1531_vm14 = vweird.f32 %v2606_v50  ;;  %vm2667_vm2 = vmor %vm1515_vm11, %vm1516_vm12 }
 0xda1   :  { %v1462_v33 = vrot.slane %v1461_v5, 2  ;;  %v1247_v39 = vsel %vm1244_vm9, %v1246_v29, %v1242_v12  ;;  %v1512_v34 = vsub.f32 1.0, %v1511_v21  ;;  %vm1501_vm13 = vweird.f32 %v2612_v32  ;;  %vm2703_vm8 = vmor %vm1530_vm5, %vm1531_vm14 }
 0xda2   :  { %v1248_v45 = vmul.f32 %v2472_v46, %v1247_v39  ;;  %v1426_v46 = vadd.f32 %v1425_v61, %v1424_v16  ;;  %v1455_v19 = vrot.slane %v1454_v49, 2  ;;  %v1527_v52 = vsub.f32 1.0, %v1526_v25  ;;  %vm2672_vm3 = vmor %vm1500_vm0, %vm1501_vm13 }
 0xda3   :  { %v1463_v22 = vadd.f32 %v1462_v33, %v1461_v5 }
 0xda4   :  { %1612 = vrot.lane.b32.xlu2 %v2352_v47, %s2022_s23  ;;  %v1284_v35 = vmul.f32 %v1248_v45, %v2386_v8  ;;  %v1427_v63 = vrot.slane %v1426_v46, 2  ;;  %v1496_v8 = vmul.f32 %v2612_v32, %v2580_v23  ;;  %v1456_v29 = vadd.f32 %v1455_v19, %v1454_v49 }
 0xda5   :  { %v1464_v13 = vrot.slane %v1463_v22, 1 }
 0xda6   :  { %v1323_v12 = vsel %vm1287_vm15, %v1284_v35, 0.0  ;;  %v1428_v45 = vadd.f32 %v1427_v63, %v1426_v46  ;;  %v1513_v35 = vmul.f32 %v2604_v28, %v1512_v34  ;;  %v1528_v63 = vmul.f32 %v2606_v50, %v1527_v52 }
 0xda7   :  { %v2630_v26 = vadd.f32 %v1464_v13, %v1463_v22  ;;  %v1324_v61 = vrot.slane %v1323_v12, 4  ;;  %v1457_v13 = vrot.slane %v1456_v29, 1 }
 0xda8   :  { %v1429_v21 = vrot.slane %v1428_v45, 1 }
 0xda9   :  { %1932 = vrcp.f32 %v2630_v26  ;;  %v1325_v19 = vadd.f32 %v1324_v61, %v1323_v12  ;;  %vm1560_vm11 = vweird.f32 %v2630_v26 }
 0xdab   :  { %v1326_v34 = vrot.slane %v1325_v19, 2 }
 0xdad   :  { %v899_v40 = vpop.xlane.xlu1 %898 }
 0xdae   :  { %v2593_v41 = vperm.slane %v899_v40, %v2408_v53  ;;  %v2596_v42 = vperm.slane %v899_v40, %v2405_v0 }
 0xdb0   :  { %v1037_v14 = vsel %vm1022_vm6, %v2593_v41, -inf  ;;  %v1044_v17 = vsel %vm1022_vm6, %v2596_v42, -inf }
 0xdb1   :  { %v1038_v43 = vrot.slane %v1037_v14, 4  ;;  %v1045_v18 = vrot.slane %v1044_v17, 4 }
 0xdb3   :  { %v1039_v37 = vmax.f32 %v1037_v14, %v1038_v43  ;;  %v1046_v60 = vmax.f32 %v1044_v17, %v1045_v18  ;;  %v1497_v14 = vsub.f32 1.0, %v1496_v8  ;;  %v1534_v43 = vand.u32 2147483647, %v2577_v48 }
 0xdb4   :  { %v1536_v8 = vand.u32 2147483648, %v2577_v48 }
 0xdb5   :  { %v1040_v6 = vrot.slane %v1039_v37, 2  ;;  %v1047_v59 = vrot.slane %v1046_v60, 2  ;;  %v905_v1 = vpop.xlane.xlu1 %904  ;;  %vm2709_vm9 = vcmp.eq.f32.partialorder %v1534_v43, 8.507059e+37 }
 0xdb6   :  { %v2624_v5 = vperm.slane %v905_v1, %v2408_v53  ;;  %v2627_v30 = vperm.slane %v905_v1, %v2405_v0 }
 0xdb7   :  { %v1041_v27 = vmax.f32 %v1039_v37, %v1040_v6  ;;  %v1048_v10 = vmax.f32 %v1046_v60, %v1047_v59  ;;  %v1319_v60 = vrot.slane %v1318_v4, 2  ;;  %v1498_v6 = vmul.f32 %v2612_v32, %v1497_v14 }
 0xdb8   :  { %v1065_v16 = vsel %vm1022_vm6, %v2624_v5, -inf  ;;  %v1072_v33 = vsel %vm1022_vm6, %v2627_v30, -inf }
 0xdb9   :  { %v1042_v39 = vrot.slane %v1041_v27, 1  ;;  %v1049_v36 = vrot.slane %v1048_v10, 1  ;;  %v1066_v40 = vrot.slane %v1065_v16, 4  ;;  %v1073_v9 = vrot.slane %v1072_v33, 4 }
 0xdbb   :  { %v1043_v22 = vmax.f32 %v1041_v27, %v1042_v39  ;;  %v1050_v17 = vmax.f32 %v1048_v10, %v1049_v36  ;;  %v1067_v49 = vmax.f32 %v1065_v16, %v1066_v40  ;;  %v1074_v18 = vmax.f32 %v1072_v33, %v1073_v9 }
 0xdbc   :  { %v1514_v10 = vadd.f32 %v2604_v28, %v1513_v35  ;;  %v2651_v16 = vadd.f32 %v1429_v21, %v1428_v45  ;;  %v1499_v39 = vadd.f32 %v2612_v32, %v1498_v6  ;;  %v1320_v40 = vadd.f32 %v1319_v60, %v1318_v4 }
 0xdbd   :  { %v1081_v37 = vsub.f32 %v2593_v41, %v1043_v22  ;;  %v1082_v20 = vsub.f32 %v2596_v42, %v1050_v17  ;;  %v1068_v46 = vrot.slane %v1067_v49, 2  ;;  %v1075_v24 = vrot.slane %v1074_v18, 2  ;;  %v2646_v41 = vpop.eup %1932 }
 0xdbe   :  { %v2648_v42 = vadd.f32 %v1457_v13, %v1456_v29  ;;  %v1506_v9 = vand.u32 2147483648, %v2580_v23  ;;  %v1556_v29 = vmul.f32 %v2646_v41, %v2630_v26  ;;  %v1504_v45 = vand.u32 2147483647, %v2580_v23 }
 0xdbf   :  { %v1091_v25 = vmul.f32 1.442695, %v1081_v37  ;;  %v1093_v59 = vmul.f32 1.442695, %v1082_v20  ;;  %v1069_v1 = vmax.f32 %v1067_v49, %v1068_v46  ;;  %v1076_v27 = vmax.f32 %v1074_v18, %v1075_v24 }
 0xdc0   :  { %v1529_v17 = vadd.f32 %v2606_v50, %v1528_v63  ;;  %v1327_v49 = vadd.f32 %v1326_v34, %v1325_v19  ;;  %v1503_v52 = vsel %vm2672_vm3, %v2612_v32, %v1499_v39  ;;  %v1518_v35 = vsel %vm2667_vm2, %v2604_v28, %v1514_v10  ;;  %v1603_v19 = vpop.permute.xlu0 %1602 }
 0xdc1   :  { %1934 = vpow2.f32 %v1091_v25  ;;  %v1070_v12 = vrot.slane %v1069_v1, 1  ;;  %v1077_v33 = vrot.slane %v1076_v27, 1  ;;  %v1321_v13 = vrot.slane %v1320_v40, 1 }
 0xdc2   :  { %1936 = vpow2.f32 %v1093_v59  ;;  %v1507_v20 = vor.u32 1.1754944e-38, %v1506_v9  ;;  %v1557_v46 = vsub.f32 1.0, %v1556_v29  ;;  %vm1505_vm4 = vcmp.eq.f32.partialorder %v1504_v45, 8.507059e+37 }
 0xdc3   :  { %v1071_v36 = vmax.f32 %v1069_v1, %v1070_v12  ;;  %v1078_v61 = vmax.f32 %v1076_v27, %v1077_v33  ;;  %1938 = vrcp.f32 %v2648_v42  ;;  %v1328_v28 = vrot.slane %v1327_v49, 1 }
 0xdc4   :  { %1940 = vrcp.f32 %v2651_v16  ;;  %v1508_v24 = vsel %vm1505_vm4, %v1507_v20, %v1503_v52  ;;  %v1522_v1 = vor.u32 1.1754944e-38, %v1521_v56  ;;  %v1537_v10 = vor.u32 1.1754944e-38, %v1536_v8 }
 0xdc5   :  { %v1085_v14 = vsub.f32 %v2624_v5, %v1071_v36  ;;  %v1086_v23 = vsub.f32 %v2627_v30, %v1078_v61  ;;  %v1558_v2 = vmul.f32 %v2646_v41, %v1557_v46  ;;  %v1509_v57 = vmul.f32 %v2523_v54, %v1508_v24 }
 0xdc6   :  { %v1533_v56 = vsel %vm2703_vm8, %v2606_v50, %v1529_v17  ;;  %v1523_v39 = vsel %vm1520_vm7, %v1522_v1, %v1518_v35  ;;  %v1322_v43 = vadd.f32 %v1321_v13, %v1320_v40  ;;  %v1329_v9 = vadd.f32 %v1328_v28, %v1327_v49 }
 0xdc7   :  { %v2678_v5 = vpop.eup %1934  ;;  %v1099_v18 = vmul.f32 1.442695, %v1085_v14  ;;  %v1101_v60 = vmul.f32 1.442695, %v1086_v23  ;;  %v1625_v8 = vmul.f32 %v1603_v19, %v1509_v57  ;;  %v1559_v50 = vadd.f32 %v2646_v41, %v1558_v2 }
 0xdc8   :  { %v2686_v37 = vpop.eup %1936  ;;  %v1117_v30 = vsel %vm1022_vm6, %v2678_v5, 0.0  ;;  %vm1561_vm12 = vweird.f32 %v2646_v41  ;;  %v1566_v4 = vand.u32 2147483648, %v2630_v26  ;;  %v1564_v49 = vand.u32 2147483647, %v2630_v26  ;;  %v1607_v13 = vpop.permute.xlu0 %1606 }
 0xdc9   :  { %v1118_v21 = vrot.slane %v1117_v30, 4  ;;  %v1124_v32 = vsel %vm1022_vm6, %v2686_v37, 0.0  ;;  %1942 = vpow2.f32 %v1099_v18  ;;  %v2692_v25 = vpop.eup %1938  ;;  %v1538_v20 = vsel %vm2709_vm9, %v1537_v10, %v1533_v56  ;;  %vm2739_vm13 = vmor %vm1560_vm11, %vm1561_vm12 }
 0xdca   :  { %v1125_v6 = vrot.slane %v1124_v32, 4  ;;  %1944 = vpow2.f32 %v1101_v60  ;;  %v2699_v63 = vpop.eup %1940  ;;  %v1541_v48 = vmul.f32 %v2692_v25, %v2648_v42  ;;  %v1639_v26 = vsel %vm1287_vm15, %v1625_v8, 0.0 }
 0xdcb   :  { %v1119_v59 = vadd.f32 %v1118_v21, %v1117_v30  ;;  %v1481_v54 = vmul.f32 %v2699_v63, %v2651_v16  ;;  %v1563_v21 = vsel %vm2739_vm13, %v2646_v41, %v1559_v50  ;;  %v1567_v28 = vor.u32 1.1754944e-38, %v1566_v4 }
 0xdcc   :  { %v1126_v33 = vadd.f32 %v1125_v6, %v1124_v32  ;;  %v1542_v35 = vsub.f32 1.0, %v1541_v48  ;;  %v2751_v6 = vmul.f32 %v2419_v62, %v1322_v43  ;;  %vm1565_vm14 = vcmp.eq.f32.partialorder %v1564_v49, 8.507059e+37 }
 0xdcd   :  { %v1120_v34 = vrot.slane %v1119_v59, 2  ;;  %v1482_v19 = vsub.f32 1.0, %v1481_v54  ;;  %v1491_v41 = vand.u32 2147483648, %v2651_v16  ;;  %v1568_v27 = vsel %vm1565_vm14, %v1567_v28, %v1563_v21 }
 0xdce   :  { %v1127_v36 = vrot.slane %v1126_v33, 2  ;;  %v1543_v1 = vmul.f32 %v2692_v25, %v1542_v35  ;;  %v1539_v57 = vmul.f32 %v2521_v31, %v1538_v20  ;;  %v1524_v56 = vmul.f32 %v2516_v15, %v1523_v39 }
 0xdcf   :  { %v2720_v29 = vpop.eup %1942  ;;  %v1121_v61 = vadd.f32 %v1120_v34, %v1119_v59  ;;  %v2756_v59 = vmul.f32 %v2419_v62, %v1329_v9  ;;  %v1483_v2 = vmul.f32 %v2699_v63, %v1482_v19  ;;  %v1714_v34 = vrot.slane %v2751_v6, 4 }
 0xdd0   :  { %v2725_v45 = vpop.eup %1944  ;;  %v1128_v14 = vadd.f32 %v1127_v36, %v1126_v33  ;;  %v1145_v40 = vsel %vm1022_vm6, %v2720_v29, 0.0  ;;  %v1640_v33 = vrot.slane %v1639_v26, 4  ;;  %v1489_v43 = vand.u32 2147483647, %v2651_v16 }
 0xdd1   :  { %v1122_v22 = vrot.slane %v1121_v61, 1  ;;  %v1146_v17 = vrot.slane %v1145_v40, 4  ;;  %v1152_v23 = vsel %vm1022_vm6, %v2725_v45, 0.0  ;;  %v1717_v9 = vrot.slane %v2756_v59, 3 }
 0xdd2   :  { %v1129_v52 = vrot.slane %v1128_v14, 1  ;;  %v1153_v18 = vrot.slane %v1152_v23, 4  ;;  %v1569_v8 = vmul.f32 %v2547_v44, %v1568_v27  ;;  %vm1546_vm0 = vweird.f32 %v2692_v25 }
 0xdd3   :  { %v2743_v30 = vadd.f32 %v1122_v22, %v1121_v61  ;;  %v1147_v60 = vadd.f32 %v1146_v17, %v1145_v40  ;;  %v1544_v61 = vadd.f32 %v2692_v25, %v1543_v1  ;;  %v1551_v54 = vand.u32 2147483648, %v2648_v42  ;;  %v1611_v17 = vpop.permute.xlu0 %1610 }
 0xdd4   :  { %v2748_v32 = vadd.f32 %v1129_v52, %v1128_v14  ;;  %v1154_v24 = vadd.f32 %v1153_v18, %v1152_v23  ;;  %v2772_v15 = vadd.f32 %v2699_v63, %v1483_v2  ;;  %v2774_v39 = vor.u32 1.1754944e-38, %v1491_v41 }
 0xdd5   :  { %1946 = vrcp.f32 %v2743_v30  ;;  %v1148_v12 = vrot.slane %v1147_v60, 2  ;;  %v2776_v4 = vadd.f32 %v1640_v33, %v1639_v26  ;;  %v1627_v22 = vmul.f32 %v1607_v13, %v1539_v57  ;;  %v1605_v26 = vpop.permute.xlu1 %1604 }
 0xdd6   :  { %1948 = vrcp.f32 %v2748_v32  ;;  %v1155_v10 = vrot.slane %v1154_v24, 2  ;;  %vm1545_vm2 = vweird.f32 %v2648_v42  ;;  %v1549_v35 = vand.u32 2147483647, %v2648_v42 }
 0xdd7   :  { %v1149_v36 = vadd.f32 %v1148_v12, %v1147_v60  ;;  %vm2787_vm3 = vmor %vm1545_vm2, %vm1546_vm0  ;;  %v1629_v13 = vmul.f32 %v1611_v17, %v1569_v8  ;;  %v1552_v60 = vor.u32 1.1754944e-38, %v1551_v54  ;;  %v1198_v19 = vand.u32 2147483647, %v2743_v30 }
 0xdd8   :  { %v1156_v48 = vadd.f32 %v1155_v10, %v1154_v24  ;;  %v1548_v46 = vsel %vm2787_vm3, %v2692_v25, %v1544_v61  ;;  %v1200_v21 = vand.u32 2147483648, %v2743_v30  ;;  %v1215_v1 = vand.u32 2147483648, %v2748_v32 }
 0xdd9   :  { %v1150_v31 = vrot.slane %v1149_v36, 1  ;;  %v1213_v41 = vand.u32 2147483647, %v2748_v32  ;;  %vm1550_vm7 = vcmp.eq.f32.partialorder %v1549_v35, 8.507059e+37  ;;  %v2802_v25 = vsel %vm1287_vm15, %v1627_v22, 0.0 }
 0xdda   :  { %v1157_v14 = vrot.slane %v1156_v48, 1  ;;  %vm1194_vm8 = vweird.f32 %v2743_v30  ;;  %v1553_v12 = vsel %vm1550_vm7, %v1552_v60, %v1548_v46  ;;  %v2806_v10 = vsel %vm1287_vm15, %v1629_v13, 0.0 }
 0xddb   :  { %v1947_v50 = vpop.eup %1946  ;;  %v2781_v49 = vadd.f32 %v1150_v31, %v1149_v36  ;;  %v1201_v2 = vor.u32 1.1754944e-38, %v1200_v21  ;;  %vm1209_vm11 = vweird.f32 %v2748_v32  ;;  %vm1199_vm12 = vcmp.eq.f32.partialorder %v1198_v19, 8.507059e+37 }
 0xddc   :  { %v1949_v40 = vpop.eup %1948  ;;  %v1190_v44 = vmul.f32 %v1947_v50, %v2743_v30  ;;  %v2783_v52 = vadd.f32 %v1157_v14, %v1156_v48  ;;  %vm1195_vm4 = vweird.f32 %v1947_v50  ;;  %v1216_v36 = vor.u32 1.1754944e-38, %v1215_v1 }
 0xddd   :  { %v1205_v23 = vmul.f32 %v1949_v40, %v2748_v32  ;;  %1950 = vrcp.f32 %v2781_v49  ;;  %vm1210_vm5 = vweird.f32 %v1949_v40  ;;  %vm1196_vm9 = vmor %vm1194_vm8, %vm1195_vm4  ;;  %v1626_v48 = vmul.f32 %v1605_v26, %v1524_v56  ;;  %v1609_v60 = vpop.permute.xlu1 %1608 }
 0xdde   :  { %v1191_v20 = vsub.f32 1.0, %v1190_v44  ;;  %1952 = vrcp.f32 %v2783_v52  ;;  %vm1211_vm13 = vmor %vm1209_vm11, %vm1210_vm5  ;;  %v1642_v61 = vrot.slane %v2776_v4, 2  ;;  %vm1214_vm14 = vcmp.eq.f32.partialorder %v1213_v41, 8.507059e+37 }
 0xddf   :  { %v1206_v24 = vsub.f32 1.0, %v1205_v23  ;;  %vm1486_vm0 = vweird.f32 %v2699_v63  ;;  %v1654_v14 = vrot.slane %v2802_v25, 4  ;;  %v1554_v23 = vmul.f32 %v2568_v3, %v1553_v12 }
 0xde0   :  { %v1192_v28 = vmul.f32 %v1947_v50, %v1191_v20  ;;  %vm1485_vm2 = vweird.f32 %v2651_v16  ;;  %v1258_v35 = vand.u32 2147483647, %v2781_v49  ;;  %v1260_v20 = vand.u32 2147483648, %v2781_v49 }
 0xde1   :  { %v1207_v42 = vmul.f32 %v1949_v40, %v1206_v24  ;;  %v1275_v21 = vand.u32 2147483648, %v2783_v52  ;;  %vm1254_vm5 = vweird.f32 %v2781_v49  ;;  %vm1269_vm8 = vweird.f32 %v2783_v52 }
 0xde2   :  { %v1193_v27 = vadd.f32 %v1947_v50, %v1192_v28  ;;  %v1261_v41 = vor.u32 1.1754944e-38, %v1260_v20 }
 0xde3   :  { %v1208_v33 = vadd.f32 %v1949_v40, %v1207_v42  ;;  %v1951_v8 = vpop.eup %1950 }
 0xde4   :  { %v1197_v57 = vsel %vm1196_vm9, %v1947_v50, %v1193_v27  ;;  %v1953_v30 = vpop.eup %1952  ;;  %v1250_v32 = vmul.f32 %v1951_v8, %v2781_v49  ;;  %v1668_v50 = vrot.slane %v2806_v10, 4  ;;  %vm1255_vm3 = vweird.f32 %v1951_v8 }
 0xde5   :  { %v1202_v54 = vsel %vm1199_vm12, %v1201_v2, %v1197_v57  ;;  %v1212_v31 = vsel %vm1211_vm13, %v1949_v40, %v1208_v33  ;;  %v1265_v17 = vmul.f32 %v1953_v30, %v2783_v52  ;;  %vm1270_vm4 = vweird.f32 %v1953_v30  ;;  %vm1256_vm7 = vmor %vm1254_vm5, %vm1255_vm3 }
 0xde6   :  { %v1203_v22 = vmul.f32 %v2678_v5, %v1202_v54  ;;  %v1217_v44 = vsel %vm1214_vm14, %v1216_v36, %v1212_v31  ;;  %v1251_v18 = vsub.f32 1.0, %v1250_v32  ;;  %v1646_v5 = vsel %vm1287_vm15, %v1626_v48, 0.0  ;;  %vm1271_vm11 = vmor %vm1269_vm8, %vm1270_vm4 }
 0xde7   :  { %v1218_v56 = vmul.f32 %v2686_v37, %v1217_v44  ;;  %v1266_v46 = vsub.f32 1.0, %v1265_v17  ;;  %v1273_v37 = vand.u32 2147483647, %v2783_v52  ;;  %vm1259_vm9 = vcmp.eq.f32.partialorder %v1258_v35, 8.507059e+37  ;;  %vm1487_vm13 = vmor %vm1485_vm2, %vm1486_vm0 }
 0xde8   :  { %v1281_v40 = vmul.f32 %v1203_v22, %v2280_v55  ;;  %v1252_v3 = vmul.f32 %v1951_v8, %v1251_v18  ;;  %v1276_v33 = vor.u32 1.1754944e-38, %v1275_v21  ;;  %v1647_v44 = vrot.slane %v1646_v5, 4 }
 0xde9   :  { %v1282_v13 = vmul.f32 %v1218_v56, %v2356_v51  ;;  %v1267_v26 = vmul.f32 %v1953_v30, %v1266_v46  ;;  %v1628_v51 = vmul.f32 %v1609_v60, %v1554_v23  ;;  %vm1274_vm12 = vcmp.eq.f32.partialorder %v1273_v37, 8.507059e+37 }
 0xdea   :  { %v1302_v19 = vsel %vm1287_vm15, %v1281_v40, 0.0  ;;  %v1253_v1 = vadd.f32 %v1951_v8, %v1252_v3  ;;  %v1488_v32 = vsel %vm1487_vm13, %v2699_v63, %v2772_v15  ;;  %v1669_v56 = vadd.f32 %v1668_v50, %v2806_v10 }
 0xdeb   :  { %v1303_v55 = vrot.slane %v1302_v19, 4  ;;  %v1309_v24 = vsel %vm1287_vm15, %v1282_v13, 0.0  ;;  %v1268_v27 = vadd.f32 %v1953_v30, %v1267_v26  ;;  %v1660_v22 = vsel %vm1287_vm15, %v1628_v51, 0.0 }
 0xdec   :  { %v1310_v28 = vrot.slane %v1309_v24, 4  ;;  %v1257_v2 = vsel %vm1256_vm7, %v1951_v8, %v1253_v1  ;;  %v1661_v18 = vrot.slane %v1660_v22, 4  ;;  %vm1490_vm14 = vcmp.eq.f32.partialorder %v1489_v43, 8.507059e+37 }
 0xded   :  { %v1304_v42 = vadd.f32 %v1303_v55, %v1302_v19  ;;  %v1262_v36 = vsel %vm1259_vm9, %v1261_v41, %v1257_v2  ;;  %v1272_v48 = vsel %vm1271_vm11, %v1953_v30, %v1268_v27  ;;  %v1655_v30 = vadd.f32 %v1654_v14, %v2802_v25 }
 0xdee   :  { %v1311_v12 = vadd.f32 %v1310_v28, %v1309_v24  ;;  %v1263_v31 = vmul.f32 %v2720_v29, %v1262_v36  ;;  %v1277_v49 = vsel %vm1274_vm12, %v1276_v33, %v1272_v48  ;;  %v1493_v63 = vsel %vm1490_vm14, %v2774_v39, %v1488_v32 }
 0xdef   :  { %v1305_v57 = vrot.slane %v1304_v42, 2  ;;  %v1278_v8 = vmul.f32 %v2725_v45, %v1277_v49  ;;  %v2848_v45 = vadd.f32 %v1642_v61, %v2776_v4  ;;  %v1648_v10 = vadd.f32 %v1647_v44, %v1646_v5 }
 0xdf0   :  { %v1312_v54 = vrot.slane %v1311_v12, 2  ;;  %v1285_v17 = vmul.f32 %v1263_v31, %v2352_v47  ;;  %v1670_v35 = vrot.slane %v1669_v56, 2  ;;  %v1662_v43 = vadd.f32 %v1661_v18, %v1660_v22 }
 0xdf1   :  { %v1306_v52 = vadd.f32 %v1305_v57, %v1304_v42  ;;  %v1286_v40 = vmul.f32 %v1278_v8, %v2392_v11  ;;  %v1656_v11 = vrot.slane %v1655_v30, 2  ;;  %vm1709_vm0 = vcmask 1042434  }
 0xdf2   :  { %v1313_v29 = vadd.f32 %v1312_v54, %v1311_v12  ;;  %v1330_v25 = vsel %vm1287_vm15, %v1285_v17, 0.0  ;;  %v1649_v60 = vrot.slane %v1648_v10, 2  ;;  %vm1712_vm2 = vcmask 1043459  }
 0xdf3   :  { %v1307_v23 = vrot.slane %v1306_v52, 1  ;;  %v1331_v47 = vrot.slane %v1330_v25, 4  ;;  %v1337_v50 = vsel %vm1287_vm15, %v1286_v40, 0.0  ;;  %v1644_v51 = vrot.slane %v2848_v45, 1 }
 0xdf4   :  { %v1314_v15 = vrot.slane %v1313_v29, 1  ;;  %v1338_v16 = vrot.slane %v1337_v50, 4  ;;  %v1663_v42 = vrot.slane %v1662_v43, 2  ;;  %v1494_v41 = vmul.f32 %v2575_v7, %v1493_v63 }
 0xdf5   :  { %v1308_v14 = vadd.f32 %v1307_v23, %v1306_v52  ;;  %v1332_v46 = vadd.f32 %v1331_v47, %v1330_v25  ;;  %v1657_v12 = vadd.f32 %v1656_v11, %v1655_v30  ;;  %v1671_v36 = vadd.f32 %v1670_v35, %v1669_v56 }
 0xdf6   :  { %v1315_v13 = vadd.f32 %v1314_v15, %v1313_v29  ;;  %v1339_v5 = vadd.f32 %v1338_v16, %v1337_v50  ;;  %vm1715_vm3 = vcmask 1044484   ;;  %v1650_v31 = vadd.f32 %v1649_v60, %v1648_v10 }
 0xdf7   :  { %v977_v20 = vpop.xlane.xlu2 %976  ;;  %v1691_v4 = vmul.f32 %v2419_v62, %v1308_v14  ;;  %v1333_v19 = vrot.slane %v1332_v46, 2  ;;  %v1664_v8 = vadd.f32 %v1663_v42, %v1662_v43  ;;  %vm1718_vm4 = vcmask 1045509  }
 0xdf8   :  { %v2855_v39 = vperm.slane %v977_v20, %v2408_v53  ;;  %v2858_v61 = vperm.slane %v977_v20, %v2405_v0  ;;  %v1692_v37 = vmul.f32 %v2419_v62, %v1315_v13  ;;  %v1340_v24 = vrot.slane %v1339_v5, 2 }
 0xdf9   :  { %v1708_v3 = vrot.slane %v1691_v4, 6  ;;  %v1334_v1 = vadd.f32 %v1333_v19, %v1332_v46  ;;  %vm1721_vm5 = vcmask 1046534   ;;  %vm1724_vm7 = vcmask 1047559  }
 0xdfa   :  { %v1386_v21 = vsel %vm1022_vm6, %v2855_v39, -inf  ;;  %v1393_v55 = vsel %vm1022_vm6, %v2858_v61, -inf  ;;  %v1711_v26 = vrot.slane %v1692_v37, 5  ;;  %v1341_v27 = vadd.f32 %v1340_v24, %v1339_v5 }
 0xdfb   :  { %v1387_v53 = vrot.slane %v1386_v21, 4  ;;  %v1394_v28 = vrot.slane %v1393_v55, 4  ;;  %v1710_v0 = vsel %vm1709_vm0, %v1708_v3, %v2610_v38  ;;  %v1335_v57 = vrot.slane %v1334_v1, 1 }
 0xdfc   :  { %v1342_v48 = vrot.slane %v1341_v27, 1  ;;  %v1713_v54 = vsel %vm1712_vm2, %v1711_v26, %v1710_v0  ;;  %v1658_v25 = vrot.slane %v1657_v12, 1  ;;  %v1651_v10 = vrot.slane %v1650_v31, 1 }
 0xdfd   :  { %v1388_v2 = vmax.f32 %v1386_v21, %v1387_v53  ;;  %v1395_v33 = vmax.f32 %v1393_v55, %v1394_v28  ;;  %v1336_v38 = vadd.f32 %v1335_v57, %v1334_v1  ;;  %v1716_v56 = vsel %vm1715_vm3, %v1714_v34, %v1713_v54 }
 0xdfe   :  { %v1343_v32 = vadd.f32 %v1342_v48, %v1341_v27  ;;  %v1719_v14 = vsel %vm1718_vm4, %v1717_v9, %v1716_v56  ;;  %v1672_v35 = vrot.slane %v1671_v36, 1  ;;  %v1645_v59 = vadd.f32 %v1644_v51, %v2848_v45  ;;  %v2885_v9 = vpop.permute.xlu0 %1731 }
 0xdff   :  { %v1389_v49 = vrot.slane %v1388_v2, 2  ;;  %v1396_v22 = vrot.slane %v1395_v33, 2  ;;  %v1601_v52 = vpop.permute.xlu2 %1600  ;;  %v1695_v30 = vmul.f32 %v2419_v62, %v1336_v38  ;;  %v1652_v4 = vadd.f32 %v1651_v10, %v1650_v31 }
 0xe00   :  { %v1624_v44 = vmul.f32 %v1601_v52, %v1494_v41  ;;  %v1696_v23 = vmul.f32 %v2419_v62, %v1343_v32  ;;  %v1665_v62 = vrot.slane %v1664_v8, 1  ;;  %v1659_v5 = vadd.f32 %v1658_v25, %v1657_v12 }
 0xe01   :  { %v1390_v7 = vmax.f32 %v1388_v2, %v1389_v49  ;;  %v1397_v29 = vmax.f32 %v1395_v33, %v1396_v22  ;;  %v1720_v15 = vrot.slane %v1695_v30, 2  ;;  %v1673_v21 = vadd.f32 %v1672_v35, %v1671_v36 }
 0xe02   :  { %v1632_v17 = vsel %vm1287_vm15, %v1624_v44, 0.0  ;;  %v1723_v47 = vrot.slane %v1696_v23, 1  ;;  %v1666_v3 = vadd.f32 %v1665_v62, %v1664_v8  ;;  %v1737_v45 = vmul.f32 %v2885_v9, %v1659_v5 }
 0xe03   :  { %v1391_v40 = vrot.slane %v1390_v7, 1  ;;  %v1398_v18 = vrot.slane %v1397_v29, 1  ;;  %v1633_v63 = vrot.slane %v1632_v17, 4  ;;  %v1722_v11 = vsel %vm1721_vm5, %v1720_v15, %v1719_v14 }
 0xe04   :  { %v1725_v13 = vsel %vm1724_vm7, %v1723_v47, %v1722_v11  ;;  %v1738_v26 = vmul.f32 %v2885_v9, %v1666_v3  ;;  %v1739_v1 = vmul.f32 %v2885_v9, %v1673_v21  ;;  %v1754_v41 = vrot.slane %v1737_v45, 5 }
 0xe05   :  { %v1392_v6 = vmax.f32 %v1390_v7, %v1391_v40  ;;  %v1399_v50 = vmax.f32 %v1397_v29, %v1398_v18  ;;  %v1634_v34 = vadd.f32 %v1633_v63, %v1632_v17  ;;  %v1727_v46 = vsel %vm117_vm1, %v1725_v13, 0.0 }
 0xe06   :  { %1728 = vadd.xlane.f32.xlu2 %v1727_v46  ;;  %v1756_v12 = vrot.slane %v1738_v26, 4  ;;  %v1758_v54 = vrot.slane %v1739_v1, 3 }
 0xe07   :  { %v1406_v16 = vsub.f32 %v2855_v39, %v1392_v6  ;;  %v1407_v43 = vsub.f32 %v2858_v61, %v1399_v50  ;;  %v1635_v20 = vrot.slane %v1634_v34, 2  ;;  %v1735_v39 = vmul.f32 %v2885_v9, %v1645_v59  ;;  %v1613_v5 = vpop.permute.xlu2 %1612 }
 0xe08   :  { %v1736_v61 = vmul.f32 %v2885_v9, %v1652_v4 }
 0xe09   :  { %v1420_v37 = vmul.f32 1.442695, %v1406_v16  ;;  %v1422_v60 = vmul.f32 1.442695, %v1407_v43  ;;  %v1636_v19 = vadd.f32 %v1635_v20, %v1634_v34  ;;  %v1750_v53 = vrot.slane %v1735_v39, 7 }
 0xe0a   :  { %v1752_v0 = vrot.slane %v1736_v61, 6 }
 0xe0b   :  { %1954 = vpow2.f32 %v1420_v37  ;;  %v1637_v55 = vrot.slane %v1636_v19, 1  ;;  %v1615_v37 = vpop.permute.xlu1 %1614 }
 0xe0c   :  { %1956 = vpow2.f32 %v1422_v60 }
 0xe0d   :  { %v1638_v24 = vadd.f32 %v1637_v55, %v1636_v19 }
 0xe0f   :  { %v1734_v28 = vmul.f32 %v2885_v9, %v1638_v24 }
 0xe11   :  { %v1955_v51 = vpop.eup %1954  ;;  %v1751_v42 = vsel %vm1706_vm10, %v1750_v53, %v1734_v28 }
 0xe12   :  { %v1957_v27 = vpop.eup %1956  ;;  %v1466_v2 = vsel %vm1022_vm6, %v1955_v51, 0.0  ;;  %v1753_v33 = vsel %vm1709_vm0, %v1752_v0, %v1751_v42 }
 0xe13   :  { %v1467_v57 = vrot.slane %v1466_v2, 4  ;;  %v1473_v36 = vsel %vm1022_vm6, %v1957_v27, 0.0  ;;  %v1755_v48 = vsel %vm1712_vm2, %v1754_v41, %v1753_v33 }
 0xe14   :  { %v1474_v31 = vrot.slane %v1473_v36, 4  ;;  %v1757_v49 = vsel %vm1715_vm3, %v1756_v12, %v1755_v48  ;;  %v2025_v48 = vmov 0  }
 0xe15   :  { %v1468_v22 = vadd.f32 %v1467_v57, %v1466_v2  ;;  %v2900_v52 = vsel %vm1718_vm4, %v1758_v54, %v1757_v49  ;;  %1841 = vset.pattern.permute.xlu0 %v2025_v48  ;;  %v1963_v54 = vld [vmem:[#allocation3 + $0x160] sm:$0xff] }
 0xe16   :  { %v1475_v38 = vadd.f32 %v1474_v31, %v1473_v36  ;;  %v1769_v31 = vperm.slane %v1963_v54, 5 }
 0xe17   :  { %v1469_v8 = vrot.slane %v1468_v22, 2 }
 0xe18   :  { %v1476_v44 = vrot.slane %v1475_v38, 2 }
 0xe19   :  { %v1470_v32 = vadd.f32 %v1469_v8, %v1468_v22 }
 0xe1a   :  { %v1477_v7 = vadd.f32 %v1476_v44, %v1475_v38 }
 0xe1b   :  { %v1471_v29 = vrot.slane %v1470_v32, 1 }
 0xe1c   :  { %v1478_v30 = vrot.slane %v1477_v7, 1 }
 0xe1d   :  { %v1472_v56 = vadd.f32 %v1471_v29, %v1470_v32 }
 0xe1e   :  { %v1479_v17 = vadd.f32 %v1478_v30, %v1477_v7 }
 0xe1f   :  { %1958 = vrcp.f32 %v1472_v56  ;;  %v1581_v10 = vand.u32 2147483648, %v1472_v56  ;;  %v1579_v6 = vand.u32 2147483647, %v1472_v56  ;;  %vm1575_vm8 = vweird.f32 %v1472_v56 }
 0xe20   :  { %1960 = vrcp.f32 %v1479_v17  ;;  %v1596_v14 = vand.u32 2147483648, %v1479_v17  ;;  %v1594_v34 = vand.u32 2147483647, %v1479_v17  ;;  %vm1590_vm9 = vweird.f32 %v1479_v17 }
 0xe21   :  { %v1582_v62 = vor.u32 1.1754944e-38, %v1581_v10  ;;  %vm1580_vm13 = vcmp.eq.f32.partialorder %v1579_v6, 8.507059e+37 }
 0xe22   :  { %v1597_v13 = vor.u32 1.1754944e-38, %v1596_v14  ;;  %vm1595_vm14 = vcmp.eq.f32.partialorder %v1594_v34, 8.507059e+37 }
 0xe25   :  { %v1959_v23 = vpop.eup %1958 }
 0xe26   :  { %v1961_v40 = vpop.eup %1960  ;;  %v1571_v18 = vmul.f32 %v1959_v23, %v1472_v56  ;;  %vm1576_vm6 = vweird.f32 %v1959_v23 }
 0xe27   :  { %v1586_v63 = vmul.f32 %v1961_v40, %v1479_v17  ;;  %vm1591_vm10 = vweird.f32 %v1961_v40  ;;  %vm1577_vm11 = vmor %vm1575_vm8, %vm1576_vm6 }
 0xe28   :  { %v1572_v15 = vsub.f32 1.0, %v1571_v18  ;;  %vm1592_vm12 = vmor %vm1590_vm9, %vm1591_vm10 }
 0xe29   :  { %v1587_v25 = vsub.f32 1.0, %v1586_v63 }
 0xe2a   :  { %v1573_v47 = vmul.f32 %v1959_v23, %v1572_v15 }
 0xe2b   :  { %v1588_v50 = vmul.f32 %v1961_v40, %v1587_v25 }
 0xe2c   :  { %v1574_v11 = vadd.f32 %v1959_v23, %v1573_v47 }
 0xe2d   :  { %v1589_v35 = vadd.f32 %v1961_v40, %v1588_v50 }
 0xe2e   :  { %v1578_v16 = vsel %vm1577_vm11, %v1959_v23, %v1574_v11 }
 0xe2f   :  { %v1593_v43 = vsel %vm1592_vm12, %v1961_v40, %v1589_v35  ;;  %v1583_v20 = vsel %vm1580_vm13, %v1582_v62, %v1578_v16 }
 0xe30   :  { %v1598_v46 = vsel %vm1595_vm14, %v1597_v13, %v1593_v43  ;;  %v1584_v59 = vmul.f32 %v1955_v51, %v1583_v20 }
 0xe31   :  { %v1599_v4 = vmul.f32 %v1957_v27, %v1598_v46 }
 0xe32   :  { %v1630_v60 = vmul.f32 %v1613_v5, %v1584_v59 }
 0xe33   :  { %v1631_v19 = vmul.f32 %v1615_v37, %v1599_v4 }
 0xe34   :  { %v1674_v3 = vsel %vm1287_vm15, %v1630_v60, 0.0 }
 0xe35   :  { %v1675_v21 = vrot.slane %v1674_v3, 4  ;;  %v1681_v39 = vsel %vm1287_vm15, %v1631_v19, 0.0  ;;  %vm1777_vm15 = vcmask 57344  }
 0xe36   :  { %v1682_v55 = vrot.slane %v1681_v39, 4 }
 0xe37   :  { %v1676_v61 = vadd.f32 %v1675_v21, %v1674_v3 }
 0xe38   :  { %v1683_v24 = vadd.f32 %v1682_v55, %v1681_v39 }
 0xe39   :  { %v1677_v45 = vrot.slane %v1676_v61, 2 }
 0xe3a   :  { %v1684_v26 = vrot.slane %v1683_v24, 2 }
 0xe3b   :  { %v1678_v53 = vadd.f32 %v1677_v45, %v1676_v61 }
 0xe3c   :  { %v1685_v28 = vadd.f32 %v1684_v26, %v1683_v24 }
 0xe3d   :  { %v1679_v1 = vrot.slane %v1678_v53, 1 }
 0xe3e   :  { %v1686_v0 = vrot.slane %v1685_v28, 1 }
 0xe3f   :  { %v1680_v51 = vadd.f32 %v1679_v1, %v1678_v53 }
 0xe40   :  { %v1687_v42 = vadd.f32 %v1686_v0, %v1685_v28 }
 0xe41   :  { %v1740_v41 = vmul.f32 %v2885_v9, %v1680_v51 }
 0xe42   :  { %v1741_v27 = vmul.f32 %v2885_v9, %v1687_v42 }
 0xe43   :  { %v1760_v12 = vrot.slane %v1740_v41, 2 }
 0xe44   :  { %v1762_v2 = vrot.slane %v1741_v27, 1 }
 0xe45   :  { %v1761_v33 = vsel %vm1721_vm5, %v1760_v12, %v2900_v52 }
 0xe46   :  { %v1763_v57 = vsel %vm1724_vm7, %v1762_v2, %v1761_v33 }
 0xe47   :  { %v1765_v36 = vsel %vm117_vm1, %v1763_v57, 0.0 }
 0xe48   :  { %1766 = vadd.xlane.f32.xlu1 %v1765_v36 }
 0xe79   :  { %v1729_v49 = vpop.xlane.xlu2 %1728 }
 0xebb   :  { %v1767_v22 = vpop.xlane.xlu1 %1766 }
 0xebc   :  { %v1768_v38 = vadd.f32 %v1767_v22, %v1729_v49 }
 0xebe   :  { %v1770_v8 = vadd.f32 %v1769_v31, %v1768_v38 }
 0xec0   :  { %1773 = vperm.xlu0 %1841, %v1770_v8  }
 0xf32   :  { %v1774_v9 = vpop.permute.xlu0 %1773 }
 0xf33   :  { %v1775_v52 = vperm.slane %v1774_v9, %v2197_v58 }
 0xf35   :  { %1778 = vst.msk [vmem:[#allocation6] sm:$0x1] %vm1777_vm15, %v1775_v52 }
 0xf36   :  { %1789 = dma.vmem_to_hbm [thread:$0]  %s1785_s25, 16, %s1787_s28, [#allocation5]  }
 0xf37   :  { %2014 = dma.done.wait [#allocation5], 16  }
 0xf38   :  { %2015 = vsyncadd [#allocation5], 4294967280 }
 0xf39   :  { %1794 = vsyncpa [#allocation4], 1 }
 0xf3a   :  { %1795 = vsyncpa [#allocation5], 1 }

</bundles_post_ra>
